<compile_context>
chip_gen: v7x
topology: tpu7x:2x2x1
jax: 0.10.0
libtpu: 0.0.40
codegen_flags: <defaults>
</compile_context>

<pallas_src>
import functools

import numpy as np
import jax
import jax.numpy as jnp
from jax.experimental import pallas as pl
from jax.experimental.pallas import tpu as pltpu

_PAD_VALUE = 1e30  # larger than any threshold -> padded cells / channels never counted


def _ecc_kernel(x_ref, lastcol_ref, o_ref, *, W, HW, steps, t_min, resolution):
    """x_ref: (T, H*W) flattened images; lastcol_ref: (1, H*W) last-column mask;
    o_ref: (T, steps) ECC per channel."""
    x = x_ref[...]                                  # (T, HW) f32
    last_col = lastcol_ref[...] > 0.5               # (1, HW) bool
    T = x.shape[0]

    pad1 = jnp.full((T, 1), _PAD_VALUE, jnp.float32)
    padW = jnp.full((T, W), _PAD_VALUE, jnp.float32)
    padW1 = jnp.full((T, W + 1), _PAD_VALUE, jnp.float32)

    # Shifted neighbours in flattened (row-major) index space, hoisted once per
    # grid step.  Row wrap-around positions are exactly the last-column /
    # last-row cells, which are masked (or land in the concat pad) so they
    # never pass the <= threshold test.
    x_r = jnp.where(last_col, _PAD_VALUE,
                    jnp.concatenate([x[:, 1:], pad1], axis=1))        # x[r, c+1]
    x_d = jnp.concatenate([x[:, W:], padW], axis=1)                    # x[r+1, c]
    x_rd = jnp.where(last_col, _PAD_VALUE,
                     jnp.concatenate([x[:, W + 1:], padW1], axis=1))   # x[r+1, c+1]

    # Lower-star (V-construction) filtration values — four (T, HW) arrays kept
    # live across the steps loop; no stacked (T, 4*HW) copy.
    v = x                                                # vertices
    eh = jnp.maximum(v, x_r)                             # horizontal edges
    ev = jnp.maximum(v, x_d)                             # vertical edges
    sq = jnp.maximum(eh, jnp.maximum(x_d, x_rd))         # squares (max of 4 verts)

    one = jnp.float32(1.0)
    zero = jnp.float32(0.0)
    t_min32 = np.float32(t_min)
    res32 = np.float32(resolution)

    # Fully-unrolled static loop over thresholds: per step 4 compares, a signed
    # combine, and one cross-lane reduce -> (T, 1).  Nothing steps-expanded is
    # ever materialized.
    cols = []
    for s in range(steps):
        thr = t_min32 + np.float32(s) * res32
        cv = jnp.where(v <= thr, one, zero)
        ceh = jnp.where(eh <= thr, one, zero)
        cev = jnp.where(ev <= thr, one, zero)
        csq = jnp.where(sq <= thr, one, zero)
        signed = (cv + csq) - (ceh + cev)                # per-pixel in {-1, 0, 1}
        cols.append(jnp.sum(signed, axis=-1, keepdims=True))   # (T, 1)

    o_ref[...] = jnp.concatenate(cols, axis=1).astype(o_ref.dtype)


def _pick_channel_tiling(n, hw):
    """Choose channels-per-block T (multiple of 8) and number of grid blocks."""
    # Live VMEM per channel ~ double-buffered input + 4 filtration arrays +
    # shift temporaries ~= 8 * (HW * 4B).  Budget ~10 MiB so the kernel fits
    # comfortably under the scoped VMEM defaults on v5e / v6e / v7x.
    per_channel_bytes = 8 * hw * 4
    t_cap = (10 << 20) // max(per_channel_bytes, 1)
    t_cap = min(512, max(8, t_cap))
    t_cap -= t_cap % 8
    t_cap = max(8, t_cap)
    # v7x: when there is enough work, keep >= 2 grid blocks so the "parallel"
    # grid axis shards across both TensorCores (no cost on single-TC v5e/v6e).
    if n >= 16:
        half = (((n + 1) // 2) + 7) // 8 * 8
        t_cap = min(t_cap, half)
    g = -(-n // t_cap)                   # number of blocks
    t = -(-n // g)                       # balance work across blocks
    t = ((t + 7) // 8) * 8               # sublane-dense (T, steps) output store
    return t, g


def cub_ecc2d_forward(x, *, interval=(0.02, 0.28), steps=32, sublevel=True,
                      as_vertices=True):
    """x: [B, C, H, W] -> ECC: [B, C, steps] (float32)."""
    assert as_vertices, "only the default V-construction is implemented"
    B, C, H, W = x.shape
    t_min, t_max = interval
    resolution = (t_max - t_min) / (steps - 1)
    N = B * C
    HW = H * W

    xf = x.astype(jnp.float32)
    if not sublevel:
        xf = -xf
    xflat = xf.reshape(N, HW)            # row-major flatten; no extra HBM copy

    T, g = _pick_channel_tiling(N, HW)
    n_pad = T * g
    if n_pad != N:
        # Pad channel dim with +PAD images: they count nothing and are sliced off.
        xflat = jnp.concatenate(
            [xflat, jnp.full((n_pad - N, HW), _PAD_VALUE, jnp.float32)], axis=0)

    # Last-image-column indicator in flattened index space (tiny broadcast input).
    last_col = (jnp.arange(HW, dtype=jnp.int32) % W == (W - 1)).astype(
        jnp.float32).reshape(1, HW)

    kernel = functools.partial(_ecc_kernel, W=W, HW=HW, steps=steps,
                               t_min=t_min, resolution=resolution)

    out = pl.pallas_call(
        kernel,
        out_shape=jax.ShapeDtypeStruct((n_pad, steps), jnp.float32),
        grid=(g,),
        in_specs=[pl.BlockSpec((T, HW), lambda i: (i, 0)),
                  pl.BlockSpec((1, HW), lambda i: (0, 0))],
        out_specs=pl.BlockSpec((T, steps), lambda i: (i, 0)),
        compiler_params=pltpu.CompilerParams(
            dimension_semantics=("parallel",),
            vmem_limit_bytes=32 * 1024 * 1024),
    )(xflat, last_col)
    return out[:N].reshape(B, C, steps)


def _ecc_reference(x_np, *, t_min, t_max, steps):
    """Pure-numpy re-implementation of the PyTorch forward (gudhi replaced by an
    explicit lower-star cubical grid of shape (2H-1, 2W-1))."""
    B, C, H, W = x_np.shape
    res = (t_max - t_min) / (steps - 1)
    out = np.zeros((B, C, steps), dtype=np.float32)
    for b in range(B):
        for c in range(C):
            img = x_np[b, c]
            gh, gw = 2 * H - 1, 2 * W - 1
            grid = np.zeros((gh, gw), dtype=np.float64)
            grid[0::2, 0::2] = img
            grid[0::2, 1::2] = np.maximum(img[:, :-1], img[:, 1:])
            grid[1::2, 0::2] = np.maximum(img[:-1, :], img[1:, :])
            grid[1::2, 1::2] = np.maximum.reduce(
                [img[:-1, :-1], img[:-1, 1:], img[1:, :-1], img[1:, 1:]])
            dim = np.zeros((gh, gw), dtype=np.int64)
            dim[1::2, :] += 1
            dim[:, 1::2] += 1
            filt = grid.flatten()
            dims = dim.flatten()
            ecc = np.zeros(steps, dtype=np.float64)
            for i in np.argsort(filt):
                f = filt[i]
                if f > t_max:
                    break
                t = max(int(np.ceil((f - t_min) / res)), 0)
                ecc[t] += (-1) ** dims[i]
            out[b, c] = np.cumsum(ecc)
    return out


if __name__ == "__main__":
    B, C, H, W = 2, 4, 16, 16
    steps = 32
    interval = (0.02, 0.28)

    key = jax.random.PRNGKey(0)
    x = jax.random.uniform(key, (B, C, H, W), dtype=jnp.float32,
                           minval=0.0, maxval=0.3)

    out = jax.block_until_ready(
        cub_ecc2d_forward(x, interval=interval, steps=steps))

    assert out.shape == (B, C, steps)
    ref = _ecc_reference(np.asarray(x), t_min=interval[0], t_max=interval[1],
                         steps=steps)
    assert np.allclose(np.asarray(out), ref, atol=1e-3), "mismatch vs reference"

    print("KERNEL_OK")
</pallas_src>

<mosaic_0001>
module attributes {stable_mosaic.version = 11 : i64} {
  func.func @_ecc_kernel(%arg0: i32, %arg1: memref<8x256xf32, #tpu.memory_space<vmem>>, %arg2: memref<1x256xf32, #tpu.memory_space<vmem>>, %arg3: memref<8x32xf32, #tpu.memory_space<vmem>>) attributes {dimension_semantics = [#tpu.dimension_semantics<parallel>], iteration_bounds = array<i64: 1>, scalar_prefetch = 0 : i64, scratch_operands = 0 : i64, tpu.core_type = #tpu.core_type<tc>, window_params = [{transform_indices = @transform_0, window_bounds = array<i64: 8, 256>}, {pipeline_mode = #tpu.pipeline_mode<synchronous>, transform_indices = @transform_1, window_bounds = array<i64: 1, 256>}, {transform_indices = @transform_2, window_bounds = array<i64: 8, 32>}]} {
    %c0 = arith.constant 0 : index
    %c0_0 = arith.constant 0 : index
    %0 = vector.load %arg1[%c0, %c0_0] : memref<8x256xf32, #tpu.memory_space<vmem>>, vector<8x256xf32>
    %c0_1 = arith.constant 0 : index
    %c0_2 = arith.constant 0 : index
    %1 = vector.load %arg2[%c0_1, %c0_2] : memref<1x256xf32, #tpu.memory_space<vmem>>, vector<1x256xf32>
    %cst = arith.constant 5.000000e-01 : f32
    %2 = vector.broadcast %cst : f32 to vector<1x256xf32>
    %3 = arith.cmpf ogt, %1, %2 : vector<1x256xf32>
    %cst_3 = arith.constant 1.000000e+30 : f32
    %4 = vector.broadcast %cst_3 : f32 to vector<8x1xf32>
    %cst_4 = arith.constant 1.000000e+30 : f32
    %5 = vector.broadcast %cst_4 : f32 to vector<8x16xf32>
    %cst_5 = arith.constant 1.000000e+30 : f32
    %6 = vector.broadcast %cst_5 : f32 to vector<8x17xf32>
    %7 = vector.extract_strided_slice %0 {offsets = [0, 1], sizes = [8, 255], strides = [1, 1]} : vector<8x256xf32> to vector<8x255xf32>
    %8 = tpu.concatenate %7, %4 in 1 : vector<8x255xf32>, vector<8x1xf32> -> vector<8x256xf32>
    %cst_6 = arith.constant 1.000000e+30 : f32
    %9 = vector.shape_cast %3 : vector<1x256xi1> to vector<1x256xi1>
    %10 = vector.broadcast %9 : vector<1x256xi1> to vector<8x256xi1>
    %11 = vector.broadcast %cst_6 : f32 to vector<8x256xf32>
    %12 = arith.select %10, %11, %8 : vector<8x256xi1>, vector<8x256xf32>
    %13 = vector.extract_strided_slice %0 {offsets = [0, 16], sizes = [8, 240], strides = [1, 1]} : vector<8x256xf32> to vector<8x240xf32>
    %14 = tpu.concatenate %13, %5 in 1 : vector<8x240xf32>, vector<8x16xf32> -> vector<8x256xf32>
    %15 = vector.extract_strided_slice %0 {offsets = [0, 17], sizes = [8, 239], strides = [1, 1]} : vector<8x256xf32> to vector<8x239xf32>
    %16 = tpu.concatenate %15, %6 in 1 : vector<8x239xf32>, vector<8x17xf32> -> vector<8x256xf32>
    %cst_7 = arith.constant 1.000000e+30 : f32
    %17 = vector.shape_cast %3 : vector<1x256xi1> to vector<1x256xi1>
    %18 = vector.broadcast %17 : vector<1x256xi1> to vector<8x256xi1>
    %19 = vector.broadcast %cst_7 : f32 to vector<8x256xf32>
    %20 = arith.select %18, %19, %16 : vector<8x256xi1>, vector<8x256xf32>
    %21 = arith.maximumf %0, %12 : vector<8x256xf32>
    %22 = arith.maximumf %0, %14 : vector<8x256xf32>
    %23 = arith.maximumf %14, %20 : vector<8x256xf32>
    %24 = arith.maximumf %21, %23 : vector<8x256xf32>
    %cst_8 = arith.constant 2.000000e-02 : f32
    %25 = vector.broadcast %cst_8 : f32 to vector<8x256xf32>
    %26 = arith.cmpf ole, %0, %25 : vector<8x256xf32>
    %cst_9 = arith.constant 1.000000e+00 : f32
    %cst_10 = arith.constant 0.000000e+00 : f32
    %27 = vector.broadcast %cst_9 : f32 to vector<8x256xf32>
    %28 = vector.broadcast %cst_10 : f32 to vector<8x256xf32>
    %29 = arith.select %26, %27, %28 : vector<8x256xi1>, vector<8x256xf32>
    %cst_11 = arith.constant 2.000000e-02 : f32
    %30 = vector.broadcast %cst_11 : f32 to vector<8x256xf32>
    %31 = arith.cmpf ole, %21, %30 : vector<8x256xf32>
    %cst_12 = arith.constant 1.000000e+00 : f32
    %cst_13 = arith.constant 0.000000e+00 : f32
    %32 = vector.broadcast %cst_12 : f32 to vector<8x256xf32>
    %33 = vector.broadcast %cst_13 : f32 to vector<8x256xf32>
    %34 = arith.select %31, %32, %33 : vector<8x256xi1>, vector<8x256xf32>
    %cst_14 = arith.constant 2.000000e-02 : f32
    %35 = vector.broadcast %cst_14 : f32 to vector<8x256xf32>
    %36 = arith.cmpf ole, %22, %35 : vector<8x256xf32>
    %cst_15 = arith.constant 1.000000e+00 : f32
    %cst_16 = arith.constant 0.000000e+00 : f32
    %37 = vector.broadcast %cst_15 : f32 to vector<8x256xf32>
    %38 = vector.broadcast %cst_16 : f32 to vector<8x256xf32>
    %39 = arith.select %36, %37, %38 : vector<8x256xi1>, vector<8x256xf32>
    %cst_17 = arith.constant 2.000000e-02 : f32
    %40 = vector.broadcast %cst_17 : f32 to vector<8x256xf32>
    %41 = arith.cmpf ole, %24, %40 : vector<8x256xf32>
    %cst_18 = arith.constant 1.000000e+00 : f32
    %cst_19 = arith.constant 0.000000e+00 : f32
    %42 = vector.broadcast %cst_18 : f32 to vector<8x256xf32>
    %43 = vector.broadcast %cst_19 : f32 to vector<8x256xf32>
    %44 = arith.select %41, %42, %43 : vector<8x256xi1>, vector<8x256xf32>
    %45 = arith.addf %29, %44 : vector<8x256xf32>
    %46 = arith.addf %34, %39 : vector<8x256xf32>
    %47 = arith.subf %45, %46 : vector<8x256xf32>
    %cst_20 = arith.constant dense<0.000000e+00> : vector<8xf32>
    %48 = vector.multi_reduction <add>, %47, %cst_20 [1] : vector<8x256xf32> to vector<8xf32>
    %49 = vector.shape_cast %48 : vector<8xf32> to vector<8x1xf32>
    %cst_21 = arith.constant 0.0283870958 : f32
    %50 = vector.broadcast %cst_21 : f32 to vector<8x256xf32>
    %51 = arith.cmpf ole, %0, %50 : vector<8x256xf32>
    %cst_22 = arith.constant 1.000000e+00 : f32
    %cst_23 = arith.constant 0.000000e+00 : f32
    %52 = vector.broadcast %cst_22 : f32 to vector<8x256xf32>
    %53 = vector.broadcast %cst_23 : f32 to vector<8x256xf32>
    %54 = arith.select %51, %52, %53 : vector<8x256xi1>, vector<8x256xf32>
    %cst_24 = arith.constant 0.0283870958 : f32
    %55 = vector.broadcast %cst_24 : f32 to vector<8x256xf32>
    %56 = arith.cmpf ole, %21, %55 : vector<8x256xf32>
    %cst_25 = arith.constant 1.000000e+00 : f32
    %cst_26 = arith.constant 0.000000e+00 : f32
    %57 = vector.broadcast %cst_25 : f32 to vector<8x256xf32>
    %58 = vector.broadcast %cst_26 : f32 to vector<8x256xf32>
    %59 = arith.select %56, %57, %58 : vector<8x256xi1>, vector<8x256xf32>
    %cst_27 = arith.constant 0.0283870958 : f32
    %60 = vector.broadcast %cst_27 : f32 to vector<8x256xf32>
    %61 = arith.cmpf ole, %22, %60 : vector<8x256xf32>
    %cst_28 = arith.constant 1.000000e+00 : f32
    %cst_29 = arith.constant 0.000000e+00 : f32
    %62 = vector.broadcast %cst_28 : f32 to vector<8x256xf32>
    %63 = vector.broadcast %cst_29 : f32 to vector<8x256xf32>
    %64 = arith.select %61, %62, %63 : vector<8x256xi1>, vector<8x256xf32>
    %cst_30 = arith.constant 0.0283870958 : f32
    %65 = vector.broadcast %cst_30 : f32 to vector<8x256xf32>
    %66 = arith.cmpf ole, %24, %65 : vector<8x256xf32>
    %cst_31 = arith.constant 1.000000e+00 : f32
    %cst_32 = arith.constant 0.000000e+00 : f32
    %67 = vector.broadcast %cst_31 : f32 to vector<8x256xf32>
    %68 = vector.broadcast %cst_32 : f32 to vector<8x256xf32>
    %69 = arith.select %66, %67, %68 : vector<8x256xi1>, vector<8x256xf32>
    %70 = arith.addf %54, %69 : vector<8x256xf32>
    %71 = arith.addf %59, %64 : vector<8x256xf32>
    %72 = arith.subf %70, %71 : vector<8x256xf32>
    %cst_33 = arith.constant dense<0.000000e+00> : vector<8xf32>
    %73 = vector.multi_reduction <add>, %72, %cst_33 [1] : vector<8x256xf32> to vector<8xf32>
    %74 = vector.shape_cast %73 : vector<8xf32> to vector<8x1xf32>
    %cst_34 = arith.constant 0.0367741957 : f32
    %75 = vector.broadcast %cst_34 : f32 to vector<8x256xf32>
    %76 = arith.cmpf ole, %0, %75 : vector<8x256xf32>
    %cst_35 = arith.constant 1.000000e+00 : f32
    %cst_36 = arith.constant 0.000000e+00 : f32
    %77 = vector.broadcast %cst_35 : f32 to vector<8x256xf32>
    %78 = vector.broadcast %cst_36 : f32 to vector<8x256xf32>
    %79 = arith.select %76, %77, %78 : vector<8x256xi1>, vector<8x256xf32>
    %cst_37 = arith.constant 0.0367741957 : f32
    %80 = vector.broadcast %cst_37 : f32 to vector<8x256xf32>
    %81 = arith.cmpf ole, %21, %80 : vector<8x256xf32>
    %cst_38 = arith.constant 1.000000e+00 : f32
    %cst_39 = arith.constant 0.000000e+00 : f32
    %82 = vector.broadcast %cst_38 : f32 to vector<8x256xf32>
    %83 = vector.broadcast %cst_39 : f32 to vector<8x256xf32>
    %84 = arith.select %81, %82, %83 : vector<8x256xi1>, vector<8x256xf32>
    %cst_40 = arith.constant 0.0367741957 : f32
    %85 = vector.broadcast %cst_40 : f32 to vector<8x256xf32>
    %86 = arith.cmpf ole, %22, %85 : vector<8x256xf32>
    %cst_41 = arith.constant 1.000000e+00 : f32
    %cst_42 = arith.constant 0.000000e+00 : f32
    %87 = vector.broadcast %cst_41 : f32 to vector<8x256xf32>
    %88 = vector.broadcast %cst_42 : f32 to vector<8x256xf32>
    %89 = arith.select %86, %87, %88 : vector<8x256xi1>, vector<8x256xf32>
    %cst_43 = arith.constant 0.0367741957 : f32
    %90 = vector.broadcast %cst_43 : f32 to vector<8x256xf32>
    %91 = arith.cmpf ole, %24, %90 : vector<8x256xf32>
    %cst_44 = arith.constant 1.000000e+00 : f32
    %cst_45 = arith.constant 0.000000e+00 : f32
    %92 = vector.broadcast %cst_44 : f32 to vector<8x256xf32>
    %93 = vector.broadcast %cst_45 : f32 to vector<8x256xf32>
    %94 = arith.select %91, %92, %93 : vector<8x256xi1>, vector<8x256xf32>
    %95 = arith.addf %79, %94 : vector<8x256xf32>
    %96 = arith.addf %84, %89 : vector<8x256xf32>
    %97 = arith.subf %95, %96 : vector<8x256xf32>
    %cst_46 = arith.constant dense<0.000000e+00> : vector<8xf32>
    %98 = vector.multi_reduction <add>, %97, %cst_46 [1] : vector<8x256xf32> to vector<8xf32>
    %99 = vector.shape_cast %98 : vector<8xf32> to vector<8x1xf32>
    %cst_47 = arith.constant 0.045161292 : f32
    %100 = vector.broadcast %cst_47 : f32 to vector<8x256xf32>
    %101 = arith.cmpf ole, %0, %100 : vector<8x256xf32>
    %cst_48 = arith.constant 1.000000e+00 : f32
    %cst_49 = arith.constant 0.000000e+00 : f32
    %102 = vector.broadcast %cst_48 : f32 to vector<8x256xf32>
    %103 = vector.broadcast %cst_49 : f32 to vector<8x256xf32>
    %104 = arith.select %101, %102, %103 : vector<8x256xi1>, vector<8x256xf32>
    %cst_50 = arith.constant 0.045161292 : f32
    %105 = vector.broadcast %cst_50 : f32 to vector<8x256xf32>
    %106 = arith.cmpf ole, %21, %105 : vector<8x256xf32>
    %cst_51 = arith.constant 1.000000e+00 : f32
    %cst_52 = arith.constant 0.000000e+00 : f32
    %107 = vector.broadcast %cst_51 : f32 to vector<8x256xf32>
    %108 = vector.broadcast %cst_52 : f32 to vector<8x256xf32>
    %109 = arith.select %106, %107, %108 : vector<8x256xi1>, vector<8x256xf32>
    %cst_53 = arith.constant 0.045161292 : f32
    %110 = vector.broadcast %cst_53 : f32 to vector<8x256xf32>
    %111 = arith.cmpf ole, %22, %110 : vector<8x256xf32>
    %cst_54 = arith.constant 1.000000e+00 : f32
    %cst_55 = arith.constant 0.000000e+00 : f32
    %112 = vector.broadcast %cst_54 : f32 to vector<8x256xf32>
    %113 = vector.broadcast %cst_55 : f32 to vector<8x256xf32>
    %114 = arith.select %111, %112, %113 : vector<8x256xi1>, vector<8x256xf32>
    %cst_56 = arith.constant 0.045161292 : f32
    %115 = vector.broadcast %cst_56 : f32 to vector<8x256xf32>
    %116 = arith.cmpf ole, %24, %115 : vector<8x256xf32>
    %cst_57 = arith.constant 1.000000e+00 : f32
    %cst_58 = arith.constant 0.000000e+00 : f32
    %117 = vector.broadcast %cst_57 : f32 to vector<8x256xf32>
    %118 = vector.broadcast %cst_58 : f32 to vector<8x256xf32>
    %119 = arith.select %116, %117, %118 : vector<8x256xi1>, vector<8x256xf32>
    %120 = arith.addf %104, %119 : vector<8x256xf32>
    %121 = arith.addf %109, %114 : vector<8x256xf32>
    %122 = arith.subf %120, %121 : vector<8x256xf32>
    %cst_59 = arith.constant dense<0.000000e+00> : vector<8xf32>
    %123 = vector.multi_reduction <add>, %122, %cst_59 [1] : vector<8x256xf32> to vector<8xf32>
    %124 = vector.shape_cast %123 : vector<8xf32> to vector<8x1xf32>
    %cst_60 = arith.constant 0.0535483882 : f32
    %125 = vector.broadcast %cst_60 : f32 to vector<8x256xf32>
    %126 = arith.cmpf ole, %0, %125 : vector<8x256xf32>
    %cst_61 = arith.constant 1.000000e+00 : f32
    %cst_62 = arith.constant 0.000000e+00 : f32
    %127 = vector.broadcast %cst_61 : f32 to vector<8x256xf32>
    %128 = vector.broadcast %cst_62 : f32 to vector<8x256xf32>
    %129 = arith.select %126, %127, %128 : vector<8x256xi1>, vector<8x256xf32>
    %cst_63 = arith.constant 0.0535483882 : f32
    %130 = vector.broadcast %cst_63 : f32 to vector<8x256xf32>
    %131 = arith.cmpf ole, %21, %130 : vector<8x256xf32>
    %cst_64 = arith.constant 1.000000e+00 : f32
    %cst_65 = arith.constant 0.000000e+00 : f32
    %132 = vector.broadcast %cst_64 : f32 to vector<8x256xf32>
    %133 = vector.broadcast %cst_65 : f32 to vector<8x256xf32>
    %134 = arith.select %131, %132, %133 : vector<8x256xi1>, vector<8x256xf32>
    %cst_66 = arith.constant 0.0535483882 : f32
    %135 = vector.broadcast %cst_66 : f32 to vector<8x256xf32>
    %136 = arith.cmpf ole, %22, %135 : vector<8x256xf32>
    %cst_67 = arith.constant 1.000000e+00 : f32
    %cst_68 = arith.constant 0.000000e+00 : f32
    %137 = vector.broadcast %cst_67 : f32 to vector<8x256xf32>
    %138 = vector.broadcast %cst_68 : f32 to vector<8x256xf32>
    %139 = arith.select %136, %137, %138 : vector<8x256xi1>, vector<8x256xf32>
    %cst_69 = arith.constant 0.0535483882 : f32
    %140 = vector.broadcast %cst_69 : f32 to vector<8x256xf32>
    %141 = arith.cmpf ole, %24, %140 : vector<8x256xf32>
    %cst_70 = arith.constant 1.000000e+00 : f32
    %cst_71 = arith.constant 0.000000e+00 : f32
    %142 = vector.broadcast %cst_70 : f32 to vector<8x256xf32>
    %143 = vector.broadcast %cst_71 : f32 to vector<8x256xf32>
    %144 = arith.select %141, %142, %143 : vector<8x256xi1>, vector<8x256xf32>
    %145 = arith.addf %129, %144 : vector<8x256xf32>
    %146 = arith.addf %134, %139 : vector<8x256xf32>
    %147 = arith.subf %145, %146 : vector<8x256xf32>
    %cst_72 = arith.constant dense<0.000000e+00> : vector<8xf32>
    %148 = vector.multi_reduction <add>, %147, %cst_72 [1] : vector<8x256xf32> to vector<8xf32>
    %149 = vector.shape_cast %148 : vector<8xf32> to vector<8x1xf32>
    %cst_73 = arith.constant 0.0619354844 : f32
    %150 = vector.broadcast %cst_73 : f32 to vector<8x256xf32>
    %151 = arith.cmpf ole, %0, %150 : vector<8x256xf32>
    %cst_74 = arith.constant 1.000000e+00 : f32
    %cst_75 = arith.constant 0.000000e+00 : f32
    %152 = vector.broadcast %cst_74 : f32 to vector<8x256xf32>
    %153 = vector.broadcast %cst_75 : f32 to vector<8x256xf32>
    %154 = arith.select %151, %152, %153 : vector<8x256xi1>, vector<8x256xf32>
    %cst_76 = arith.constant 0.0619354844 : f32
    %155 = vector.broadcast %cst_76 : f32 to vector<8x256xf32>
    %156 = arith.cmpf ole, %21, %155 : vector<8x256xf32>
    %cst_77 = arith.constant 1.000000e+00 : f32
    %cst_78 = arith.constant 0.000000e+00 : f32
    %157 = vector.broadcast %cst_77 : f32 to vector<8x256xf32>
    %158 = vector.broadcast %cst_78 : f32 to vector<8x256xf32>
    %159 = arith.select %156, %157, %158 : vector<8x256xi1>, vector<8x256xf32>
    %cst_79 = arith.constant 0.0619354844 : f32
    %160 = vector.broadcast %cst_79 : f32 to vector<8x256xf32>
    %161 = arith.cmpf ole, %22, %160 : vector<8x256xf32>
    %cst_80 = arith.constant 1.000000e+00 : f32
    %cst_81 = arith.constant 0.000000e+00 : f32
    %162 = vector.broadcast %cst_80 : f32 to vector<8x256xf32>
    %163 = vector.broadcast %cst_81 : f32 to vector<8x256xf32>
    %164 = arith.select %161, %162, %163 : vector<8x256xi1>, vector<8x256xf32>
    %cst_82 = arith.constant 0.0619354844 : f32
    %165 = vector.broadcast %cst_82 : f32 to vector<8x256xf32>
    %166 = arith.cmpf ole, %24, %165 : vector<8x256xf32>
    %cst_83 = arith.constant 1.000000e+00 : f32
    %cst_84 = arith.constant 0.000000e+00 : f32
    %167 = vector.broadcast %cst_83 : f32 to vector<8x256xf32>
    %168 = vector.broadcast %cst_84 : f32 to vector<8x256xf32>
    %169 = arith.select %166, %167, %168 : vector<8x256xi1>, vector<8x256xf32>
    %170 = arith.addf %154, %169 : vector<8x256xf32>
    %171 = arith.addf %159, %164 : vector<8x256xf32>
    %172 = arith.subf %170, %171 : vector<8x256xf32>
    %cst_85 = arith.constant dense<0.000000e+00> : vector<8xf32>
    %173 = vector.multi_reduction <add>, %172, %cst_85 [1] : vector<8x256xf32> to vector<8xf32>
    %174 = vector.shape_cast %173 : vector<8xf32> to vector<8x1xf32>
    %cst_86 = arith.constant 0.0703225881 : f32
    %175 = vector.broadcast %cst_86 : f32 to vector<8x256xf32>
    %176 = arith.cmpf ole, %0, %175 : vector<8x256xf32>
    %cst_87 = arith.constant 1.000000e+00 : f32
    %cst_88 = arith.constant 0.000000e+00 : f32
    %177 = vector.broadcast %cst_87 : f32 to vector<8x256xf32>
    %178 = vector.broadcast %cst_88 : f32 to vector<8x256xf32>
    %179 = arith.select %176, %177, %178 : vector<8x256xi1>, vector<8x256xf32>
    %cst_89 = arith.constant 0.0703225881 : f32
    %180 = vector.broadcast %cst_89 : f32 to vector<8x256xf32>
    %181 = arith.cmpf ole, %21, %180 : vector<8x256xf32>
    %cst_90 = arith.constant 1.000000e+00 : f32
    %cst_91 = arith.constant 0.000000e+00 : f32
    %182 = vector.broadcast %cst_90 : f32 to vector<8x256xf32>
    %183 = vector.broadcast %cst_91 : f32 to vector<8x256xf32>
    %184 = arith.select %181, %182, %183 : vector<8x256xi1>, vector<8x256xf32>
    %cst_92 = arith.constant 0.0703225881 : f32
    %185 = vector.broadcast %cst_92 : f32 to vector<8x256xf32>
    %186 = arith.cmpf ole, %22, %185 : vector<8x256xf32>
    %cst_93 = arith.constant 1.000000e+00 : f32
    %cst_94 = arith.constant 0.000000e+00 : f32
    %187 = vector.broadcast %cst_93 : f32 to vector<8x256xf32>
    %188 = vector.broadcast %cst_94 : f32 to vector<8x256xf32>
    %189 = arith.select %186, %187, %188 : vector<8x256xi1>, vector<8x256xf32>
    %cst_95 = arith.constant 0.0703225881 : f32
    %190 = vector.broadcast %cst_95 : f32 to vector<8x256xf32>
    %191 = arith.cmpf ole, %24, %190 : vector<8x256xf32>
    %cst_96 = arith.constant 1.000000e+00 : f32
    %cst_97 = arith.constant 0.000000e+00 : f32
    %192 = vector.broadcast %cst_96 : f32 to vector<8x256xf32>
    %193 = vector.broadcast %cst_97 : f32 to vector<8x256xf32>
    %194 = arith.select %191, %192, %193 : vector<8x256xi1>, vector<8x256xf32>
    %195 = arith.addf %179, %194 : vector<8x256xf32>
    %196 = arith.addf %184, %189 : vector<8x256xf32>
    %197 = arith.subf %195, %196 : vector<8x256xf32>
    %cst_98 = arith.constant dense<0.000000e+00> : vector<8xf32>
    %198 = vector.multi_reduction <add>, %197, %cst_98 [1] : vector<8x256xf32> to vector<8xf32>
    %199 = vector.shape_cast %198 : vector<8xf32> to vector<8x1xf32>
    %cst_99 = arith.constant 0.0787096769 : f32
    %200 = vector.broadcast %cst_99 : f32 to vector<8x256xf32>
    %201 = arith.cmpf ole, %0, %200 : vector<8x256xf32>
    %cst_100 = arith.constant 1.000000e+00 : f32
    %cst_101 = arith.constant 0.000000e+00 : f32
    %202 = vector.broadcast %cst_100 : f32 to vector<8x256xf32>
    %203 = vector.broadcast %cst_101 : f32 to vector<8x256xf32>
    %204 = arith.select %201, %202, %203 : vector<8x256xi1>, vector<8x256xf32>
    %cst_102 = arith.constant 0.0787096769 : f32
    %205 = vector.broadcast %cst_102 : f32 to vector<8x256xf32>
    %206 = arith.cmpf ole, %21, %205 : vector<8x256xf32>
    %cst_103 = arith.constant 1.000000e+00 : f32
    %cst_104 = arith.constant 0.000000e+00 : f32
    %207 = vector.broadcast %cst_103 : f32 to vector<8x256xf32>
    %208 = vector.broadcast %cst_104 : f32 to vector<8x256xf32>
    %209 = arith.select %206, %207, %208 : vector<8x256xi1>, vector<8x256xf32>
    %cst_105 = arith.constant 0.0787096769 : f32
    %210 = vector.broadcast %cst_105 : f32 to vector<8x256xf32>
    %211 = arith.cmpf ole, %22, %210 : vector<8x256xf32>
    %cst_106 = arith.constant 1.000000e+00 : f32
    %cst_107 = arith.constant 0.000000e+00 : f32
    %212 = vector.broadcast %cst_106 : f32 to vector<8x256xf32>
    %213 = vector.broadcast %cst_107 : f32 to vector<8x256xf32>
    %214 = arith.select %211, %212, %213 : vector<8x256xi1>, vector<8x256xf32>
    %cst_108 = arith.constant 0.0787096769 : f32
    %215 = vector.broadcast %cst_108 : f32 to vector<8x256xf32>
    %216 = arith.cmpf ole, %24, %215 : vector<8x256xf32>
    %cst_109 = arith.constant 1.000000e+00 : f32
    %cst_110 = arith.constant 0.000000e+00 : f32
    %217 = vector.broadcast %cst_109 : f32 to vector<8x256xf32>
    %218 = vector.broadcast %cst_110 : f32 to vector<8x256xf32>
    %219 = arith.select %216, %217, %218 : vector<8x256xi1>, vector<8x256xf32>
    %220 = arith.addf %204, %219 : vector<8x256xf32>
    %221 = arith.addf %209, %214 : vector<8x256xf32>
    %222 = arith.subf %220, %221 : vector<8x256xf32>
    %cst_111 = arith.constant dense<0.000000e+00> : vector<8xf32>
    %223 = vector.multi_reduction <add>, %222, %cst_111 [1] : vector<8x256xf32> to vector<8xf32>
    %224 = vector.shape_cast %223 : vector<8xf32> to vector<8x1xf32>
    %cst_112 = arith.constant 0.0870967805 : f32
    %225 = vector.broadcast %cst_112 : f32 to vector<8x256xf32>
    %226 = arith.cmpf ole, %0, %225 : vector<8x256xf32>
    %cst_113 = arith.constant 1.000000e+00 : f32
    %cst_114 = arith.constant 0.000000e+00 : f32
    %227 = vector.broadcast %cst_113 : f32 to vector<8x256xf32>
    %228 = vector.broadcast %cst_114 : f32 to vector<8x256xf32>
    %229 = arith.select %226, %227, %228 : vector<8x256xi1>, vector<8x256xf32>
    %cst_115 = arith.constant 0.0870967805 : f32
    %230 = vector.broadcast %cst_115 : f32 to vector<8x256xf32>
    %231 = arith.cmpf ole, %21, %230 : vector<8x256xf32>
    %cst_116 = arith.constant 1.000000e+00 : f32
    %cst_117 = arith.constant 0.000000e+00 : f32
    %232 = vector.broadcast %cst_116 : f32 to vector<8x256xf32>
    %233 = vector.broadcast %cst_117 : f32 to vector<8x256xf32>
    %234 = arith.select %231, %232, %233 : vector<8x256xi1>, vector<8x256xf32>
    %cst_118 = arith.constant 0.0870967805 : f32
    %235 = vector.broadcast %cst_118 : f32 to vector<8x256xf32>
    %236 = arith.cmpf ole, %22, %235 : vector<8x256xf32>
    %cst_119 = arith.constant 1.000000e+00 : f32
    %cst_120 = arith.constant 0.000000e+00 : f32
    %237 = vector.broadcast %cst_119 : f32 to vector<8x256xf32>
    %238 = vector.broadcast %cst_120 : f32 to vector<8x256xf32>
    %239 = arith.select %236, %237, %238 : vector<8x256xi1>, vector<8x256xf32>
    %cst_121 = arith.constant 0.0870967805 : f32
    %240 = vector.broadcast %cst_121 : f32 to vector<8x256xf32>
    %241 = arith.cmpf ole, %24, %240 : vector<8x256xf32>
    %cst_122 = arith.constant 1.000000e+00 : f32
    %cst_123 = arith.constant 0.000000e+00 : f32
    %242 = vector.broadcast %cst_122 : f32 to vector<8x256xf32>
    %243 = vector.broadcast %cst_123 : f32 to vector<8x256xf32>
    %244 = arith.select %241, %242, %243 : vector<8x256xi1>, vector<8x256xf32>
    %245 = arith.addf %229, %244 : vector<8x256xf32>
    %246 = arith.addf %234, %239 : vector<8x256xf32>
    %247 = arith.subf %245, %246 : vector<8x256xf32>
    %cst_124 = arith.constant dense<0.000000e+00> : vector<8xf32>
    %248 = vector.multi_reduction <add>, %247, %cst_124 [1] : vector<8x256xf32> to vector<8xf32>
    %249 = vector.shape_cast %248 : vector<8xf32> to vector<8x1xf32>
    %cst_125 = arith.constant 0.0954838693 : f32
    %250 = vector.broadcast %cst_125 : f32 to vector<8x256xf32>
    %251 = arith.cmpf ole, %0, %250 : vector<8x256xf32>
    %cst_126 = arith.constant 1.000000e+00 : f32
    %cst_127 = arith.constant 0.000000e+00 : f32
    %252 = vector.broadcast %cst_126 : f32 to vector<8x256xf32>
    %253 = vector.broadcast %cst_127 : f32 to vector<8x256xf32>
    %254 = arith.select %251, %252, %253 : vector<8x256xi1>, vector<8x256xf32>
    %cst_128 = arith.constant 0.0954838693 : f32
    %255 = vector.broadcast %cst_128 : f32 to vector<8x256xf32>
    %256 = arith.cmpf ole, %21, %255 : vector<8x256xf32>
    %cst_129 = arith.constant 1.000000e+00 : f32
    %cst_130 = arith.constant 0.000000e+00 : f32
    %257 = vector.broadcast %cst_129 : f32 to vector<8x256xf32>
    %258 = vector.broadcast %cst_130 : f32 to vector<8x256xf32>
    %259 = arith.select %256, %257, %258 : vector<8x256xi1>, vector<8x256xf32>
    %cst_131 = arith.constant 0.0954838693 : f32
    %260 = vector.broadcast %cst_131 : f32 to vector<8x256xf32>
    %261 = arith.cmpf ole, %22, %260 : vector<8x256xf32>
    %cst_132 = arith.constant 1.000000e+00 : f32
    %cst_133 = arith.constant 0.000000e+00 : f32
    %262 = vector.broadcast %cst_132 : f32 to vector<8x256xf32>
    %263 = vector.broadcast %cst_133 : f32 to vector<8x256xf32>
    %264 = arith.select %261, %262, %263 : vector<8x256xi1>, vector<8x256xf32>
    %cst_134 = arith.constant 0.0954838693 : f32
    %265 = vector.broadcast %cst_134 : f32 to vector<8x256xf32>
    %266 = arith.cmpf ole, %24, %265 : vector<8x256xf32>
    %cst_135 = arith.constant 1.000000e+00 : f32
    %cst_136 = arith.constant 0.000000e+00 : f32
    %267 = vector.broadcast %cst_135 : f32 to vector<8x256xf32>
    %268 = vector.broadcast %cst_136 : f32 to vector<8x256xf32>
    %269 = arith.select %266, %267, %268 : vector<8x256xi1>, vector<8x256xf32>
    %270 = arith.addf %254, %269 : vector<8x256xf32>
    %271 = arith.addf %259, %264 : vector<8x256xf32>
    %272 = arith.subf %270, %271 : vector<8x256xf32>
    %cst_137 = arith.constant dense<0.000000e+00> : vector<8xf32>
    %273 = vector.multi_reduction <add>, %272, %cst_137 [1] : vector<8x256xf32> to vector<8xf32>
    %274 = vector.shape_cast %273 : vector<8xf32> to vector<8x1xf32>
    %cst_138 = arith.constant 0.103870973 : f32
    %275 = vector.broadcast %cst_138 : f32 to vector<8x256xf32>
    %276 = arith.cmpf ole, %0, %275 : vector<8x256xf32>
    %cst_139 = arith.constant 1.000000e+00 : f32
    %cst_140 = arith.constant 0.000000e+00 : f32
    %277 = vector.broadcast %cst_139 : f32 to vector<8x256xf32>
    %278 = vector.broadcast %cst_140 : f32 to vector<8x256xf32>
    %279 = arith.select %276, %277, %278 : vector<8x256xi1>, vector<8x256xf32>
    %cst_141 = arith.constant 0.103870973 : f32
    %280 = vector.broadcast %cst_141 : f32 to vector<8x256xf32>
    %281 = arith.cmpf ole, %21, %280 : vector<8x256xf32>
    %cst_142 = arith.constant 1.000000e+00 : f32
    %cst_143 = arith.constant 0.000000e+00 : f32
    %282 = vector.broadcast %cst_142 : f32 to vector<8x256xf32>
    %283 = vector.broadcast %cst_143 : f32 to vector<8x256xf32>
    %284 = arith.select %281, %282, %283 : vector<8x256xi1>, vector<8x256xf32>
    %cst_144 = arith.constant 0.103870973 : f32
    %285 = vector.broadcast %cst_144 : f32 to vector<8x256xf32>
    %286 = arith.cmpf ole, %22, %285 : vector<8x256xf32>
    %cst_145 = arith.constant 1.000000e+00 : f32
    %cst_146 = arith.constant 0.000000e+00 : f32
    %287 = vector.broadcast %cst_145 : f32 to vector<8x256xf32>
    %288 = vector.broadcast %cst_146 : f32 to vector<8x256xf32>
    %289 = arith.select %286, %287, %288 : vector<8x256xi1>, vector<8x256xf32>
    %cst_147 = arith.constant 0.103870973 : f32
    %290 = vector.broadcast %cst_147 : f32 to vector<8x256xf32>
    %291 = arith.cmpf ole, %24, %290 : vector<8x256xf32>
    %cst_148 = arith.constant 1.000000e+00 : f32
    %cst_149 = arith.constant 0.000000e+00 : f32
    %292 = vector.broadcast %cst_148 : f32 to vector<8x256xf32>
    %293 = vector.broadcast %cst_149 : f32 to vector<8x256xf32>
    %294 = arith.select %291, %292, %293 : vector<8x256xi1>, vector<8x256xf32>
    %295 = arith.addf %279, %294 : vector<8x256xf32>
    %296 = arith.addf %284, %289 : vector<8x256xf32>
    %297 = arith.subf %295, %296 : vector<8x256xf32>
    %cst_150 = arith.constant dense<0.000000e+00> : vector<8xf32>
    %298 = vector.multi_reduction <add>, %297, %cst_150 [1] : vector<8x256xf32> to vector<8xf32>
    %299 = vector.shape_cast %298 : vector<8xf32> to vector<8x1xf32>
    %cst_151 = arith.constant 0.112258062 : f32
    %300 = vector.broadcast %cst_151 : f32 to vector<8x256xf32>
    %301 = arith.cmpf ole, %0, %300 : vector<8x256xf32>
    %cst_152 = arith.constant 1.000000e+00 : f32
    %cst_153 = arith.constant 0.000000e+00 : f32
    %302 = vector.broadcast %cst_152 : f32 to vector<8x256xf32>
    %303 = vector.broadcast %cst_153 : f32 to vector<8x256xf32>
    %304 = arith.select %301, %302, %303 : vector<8x256xi1>, vector<8x256xf32>
    %cst_154 = arith.constant 0.112258062 : f32
    %305 = vector.broadcast %cst_154 : f32 to vector<8x256xf32>
    %306 = arith.cmpf ole, %21, %305 : vector<8x256xf32>
    %cst_155 = arith.constant 1.000000e+00 : f32
    %cst_156 = arith.constant 0.000000e+00 : f32
    %307 = vector.broadcast %cst_155 : f32 to vector<8x256xf32>
    %308 = vector.broadcast %cst_156 : f32 to vector<8x256xf32>
    %309 = arith.select %306, %307, %308 : vector<8x256xi1>, vector<8x256xf32>
    %cst_157 = arith.constant 0.112258062 : f32
    %310 = vector.broadcast %cst_157 : f32 to vector<8x256xf32>
    %311 = arith.cmpf ole, %22, %310 : vector<8x256xf32>
    %cst_158 = arith.constant 1.000000e+00 : f32
    %cst_159 = arith.constant 0.000000e+00 : f32
    %312 = vector.broadcast %cst_158 : f32 to vector<8x256xf32>
    %313 = vector.broadcast %cst_159 : f32 to vector<8x256xf32>
    %314 = arith.select %311, %312, %313 : vector<8x256xi1>, vector<8x256xf32>
    %cst_160 = arith.constant 0.112258062 : f32
    %315 = vector.broadcast %cst_160 : f32 to vector<8x256xf32>
    %316 = arith.cmpf ole, %24, %315 : vector<8x256xf32>
    %cst_161 = arith.constant 1.000000e+00 : f32
    %cst_162 = arith.constant 0.000000e+00 : f32
    %317 = vector.broadcast %cst_161 : f32 to vector<8x256xf32>
    %318 = vector.broadcast %cst_162 : f32 to vector<8x256xf32>
    %319 = arith.select %316, %317, %318 : vector<8x256xi1>, vector<8x256xf32>
    %320 = arith.addf %304, %319 : vector<8x256xf32>
    %321 = arith.addf %309, %314 : vector<8x256xf32>
    %322 = arith.subf %320, %321 : vector<8x256xf32>
    %cst_163 = arith.constant dense<0.000000e+00> : vector<8xf32>
    %323 = vector.multi_reduction <add>, %322, %cst_163 [1] : vector<8x256xf32> to vector<8xf32>
    %324 = vector.shape_cast %323 : vector<8xf32> to vector<8x1xf32>
    %cst_164 = arith.constant 0.120645165 : f32
    %325 = vector.broadcast %cst_164 : f32 to vector<8x256xf32>
    %326 = arith.cmpf ole, %0, %325 : vector<8x256xf32>
    %cst_165 = arith.constant 1.000000e+00 : f32
    %cst_166 = arith.constant 0.000000e+00 : f32
    %327 = vector.broadcast %cst_165 : f32 to vector<8x256xf32>
    %328 = vector.broadcast %cst_166 : f32 to vector<8x256xf32>
    %329 = arith.select %326, %327, %328 : vector<8x256xi1>, vector<8x256xf32>
    %cst_167 = arith.constant 0.120645165 : f32
    %330 = vector.broadcast %cst_167 : f32 to vector<8x256xf32>
    %331 = arith.cmpf ole, %21, %330 : vector<8x256xf32>
    %cst_168 = arith.constant 1.000000e+00 : f32
    %cst_169 = arith.constant 0.000000e+00 : f32
    %332 = vector.broadcast %cst_168 : f32 to vector<8x256xf32>
    %333 = vector.broadcast %cst_169 : f32 to vector<8x256xf32>
    %334 = arith.select %331, %332, %333 : vector<8x256xi1>, vector<8x256xf32>
    %cst_170 = arith.constant 0.120645165 : f32
    %335 = vector.broadcast %cst_170 : f32 to vector<8x256xf32>
    %336 = arith.cmpf ole, %22, %335 : vector<8x256xf32>
    %cst_171 = arith.constant 1.000000e+00 : f32
    %cst_172 = arith.constant 0.000000e+00 : f32
    %337 = vector.broadcast %cst_171 : f32 to vector<8x256xf32>
    %338 = vector.broadcast %cst_172 : f32 to vector<8x256xf32>
    %339 = arith.select %336, %337, %338 : vector<8x256xi1>, vector<8x256xf32>
    %cst_173 = arith.constant 0.120645165 : f32
    %340 = vector.broadcast %cst_173 : f32 to vector<8x256xf32>
    %341 = arith.cmpf ole, %24, %340 : vector<8x256xf32>
    %cst_174 = arith.constant 1.000000e+00 : f32
    %cst_175 = arith.constant 0.000000e+00 : f32
    %342 = vector.broadcast %cst_174 : f32 to vector<8x256xf32>
    %343 = vector.broadcast %cst_175 : f32 to vector<8x256xf32>
    %344 = arith.select %341, %342, %343 : vector<8x256xi1>, vector<8x256xf32>
    %345 = arith.addf %329, %344 : vector<8x256xf32>
    %346 = arith.addf %334, %339 : vector<8x256xf32>
    %347 = arith.subf %345, %346 : vector<8x256xf32>
    %cst_176 = arith.constant dense<0.000000e+00> : vector<8xf32>
    %348 = vector.multi_reduction <add>, %347, %cst_176 [1] : vector<8x256xf32> to vector<8xf32>
    %349 = vector.shape_cast %348 : vector<8xf32> to vector<8x1xf32>
    %cst_177 = arith.constant 0.129032269 : f32
    %350 = vector.broadcast %cst_177 : f32 to vector<8x256xf32>
    %351 = arith.cmpf ole, %0, %350 : vector<8x256xf32>
    %cst_178 = arith.constant 1.000000e+00 : f32
    %cst_179 = arith.constant 0.000000e+00 : f32
    %352 = vector.broadcast %cst_178 : f32 to vector<8x256xf32>
    %353 = vector.broadcast %cst_179 : f32 to vector<8x256xf32>
    %354 = arith.select %351, %352, %353 : vector<8x256xi1>, vector<8x256xf32>
    %cst_180 = arith.constant 0.129032269 : f32
    %355 = vector.broadcast %cst_180 : f32 to vector<8x256xf32>
    %356 = arith.cmpf ole, %21, %355 : vector<8x256xf32>
    %cst_181 = arith.constant 1.000000e+00 : f32
    %cst_182 = arith.constant 0.000000e+00 : f32
    %357 = vector.broadcast %cst_181 : f32 to vector<8x256xf32>
    %358 = vector.broadcast %cst_182 : f32 to vector<8x256xf32>
    %359 = arith.select %356, %357, %358 : vector<8x256xi1>, vector<8x256xf32>
    %cst_183 = arith.constant 0.129032269 : f32
    %360 = vector.broadcast %cst_183 : f32 to vector<8x256xf32>
    %361 = arith.cmpf ole, %22, %360 : vector<8x256xf32>
    %cst_184 = arith.constant 1.000000e+00 : f32
    %cst_185 = arith.constant 0.000000e+00 : f32
    %362 = vector.broadcast %cst_184 : f32 to vector<8x256xf32>
    %363 = vector.broadcast %cst_185 : f32 to vector<8x256xf32>
    %364 = arith.select %361, %362, %363 : vector<8x256xi1>, vector<8x256xf32>
    %cst_186 = arith.constant 0.129032269 : f32
    %365 = vector.broadcast %cst_186 : f32 to vector<8x256xf32>
    %366 = arith.cmpf ole, %24, %365 : vector<8x256xf32>
    %cst_187 = arith.constant 1.000000e+00 : f32
    %cst_188 = arith.constant 0.000000e+00 : f32
    %367 = vector.broadcast %cst_187 : f32 to vector<8x256xf32>
    %368 = vector.broadcast %cst_188 : f32 to vector<8x256xf32>
    %369 = arith.select %366, %367, %368 : vector<8x256xi1>, vector<8x256xf32>
    %370 = arith.addf %354, %369 : vector<8x256xf32>
    %371 = arith.addf %359, %364 : vector<8x256xf32>
    %372 = arith.subf %370, %371 : vector<8x256xf32>
    %cst_189 = arith.constant dense<0.000000e+00> : vector<8xf32>
    %373 = vector.multi_reduction <add>, %372, %cst_189 [1] : vector<8x256xf32> to vector<8xf32>
    %374 = vector.shape_cast %373 : vector<8xf32> to vector<8x1xf32>
    %cst_190 = arith.constant 0.137419358 : f32
    %375 = vector.broadcast %cst_190 : f32 to vector<8x256xf32>
    %376 = arith.cmpf ole, %0, %375 : vector<8x256xf32>
    %cst_191 = arith.constant 1.000000e+00 : f32
    %cst_192 = arith.constant 0.000000e+00 : f32
    %377 = vector.broadcast %cst_191 : f32 to vector<8x256xf32>
    %378 = vector.broadcast %cst_192 : f32 to vector<8x256xf32>
    %379 = arith.select %376, %377, %378 : vector<8x256xi1>, vector<8x256xf32>
    %cst_193 = arith.constant 0.137419358 : f32
    %380 = vector.broadcast %cst_193 : f32 to vector<8x256xf32>
    %381 = arith.cmpf ole, %21, %380 : vector<8x256xf32>
    %cst_194 = arith.constant 1.000000e+00 : f32
    %cst_195 = arith.constant 0.000000e+00 : f32
    %382 = vector.broadcast %cst_194 : f32 to vector<8x256xf32>
    %383 = vector.broadcast %cst_195 : f32 to vector<8x256xf32>
    %384 = arith.select %381, %382, %383 : vector<8x256xi1>, vector<8x256xf32>
    %cst_196 = arith.constant 0.137419358 : f32
    %385 = vector.broadcast %cst_196 : f32 to vector<8x256xf32>
    %386 = arith.cmpf ole, %22, %385 : vector<8x256xf32>
    %cst_197 = arith.constant 1.000000e+00 : f32
    %cst_198 = arith.constant 0.000000e+00 : f32
    %387 = vector.broadcast %cst_197 : f32 to vector<8x256xf32>
    %388 = vector.broadcast %cst_198 : f32 to vector<8x256xf32>
    %389 = arith.select %386, %387, %388 : vector<8x256xi1>, vector<8x256xf32>
    %cst_199 = arith.constant 0.137419358 : f32
    %390 = vector.broadcast %cst_199 : f32 to vector<8x256xf32>
    %391 = arith.cmpf ole, %24, %390 : vector<8x256xf32>
    %cst_200 = arith.constant 1.000000e+00 : f32
    %cst_201 = arith.constant 0.000000e+00 : f32
    %392 = vector.broadcast %cst_200 : f32 to vector<8x256xf32>
    %393 = vector.broadcast %cst_201 : f32 to vector<8x256xf32>
    %394 = arith.select %391, %392, %393 : vector<8x256xi1>, vector<8x256xf32>
    %395 = arith.addf %379, %394 : vector<8x256xf32>
    %396 = arith.addf %384, %389 : vector<8x256xf32>
    %397 = arith.subf %395, %396 : vector<8x256xf32>
    %cst_202 = arith.constant dense<0.000000e+00> : vector<8xf32>
    %398 = vector.multi_reduction <add>, %397, %cst_202 [1] : vector<8x256xf32> to vector<8xf32>
    %399 = vector.shape_cast %398 : vector<8xf32> to vector<8x1xf32>
    %cst_203 = arith.constant 0.145806447 : f32
    %400 = vector.broadcast %cst_203 : f32 to vector<8x256xf32>
    %401 = arith.cmpf ole, %0, %400 : vector<8x256xf32>
    %cst_204 = arith.constant 1.000000e+00 : f32
    %cst_205 = arith.constant 0.000000e+00 : f32
    %402 = vector.broadcast %cst_204 : f32 to vector<8x256xf32>
    %403 = vector.broadcast %cst_205 : f32 to vector<8x256xf32>
    %404 = arith.select %401, %402, %403 : vector<8x256xi1>, vector<8x256xf32>
    %cst_206 = arith.constant 0.145806447 : f32
    %405 = vector.broadcast %cst_206 : f32 to vector<8x256xf32>
    %406 = arith.cmpf ole, %21, %405 : vector<8x256xf32>
    %cst_207 = arith.constant 1.000000e+00 : f32
    %cst_208 = arith.constant 0.000000e+00 : f32
    %407 = vector.broadcast %cst_207 : f32 to vector<8x256xf32>
    %408 = vector.broadcast %cst_208 : f32 to vector<8x256xf32>
    %409 = arith.select %406, %407, %408 : vector<8x256xi1>, vector<8x256xf32>
    %cst_209 = arith.constant 0.145806447 : f32
    %410 = vector.broadcast %cst_209 : f32 to vector<8x256xf32>
    %411 = arith.cmpf ole, %22, %410 : vector<8x256xf32>
    %cst_210 = arith.constant 1.000000e+00 : f32
    %cst_211 = arith.constant 0.000000e+00 : f32
    %412 = vector.broadcast %cst_210 : f32 to vector<8x256xf32>
    %413 = vector.broadcast %cst_211 : f32 to vector<8x256xf32>
    %414 = arith.select %411, %412, %413 : vector<8x256xi1>, vector<8x256xf32>
    %cst_212 = arith.constant 0.145806447 : f32
    %415 = vector.broadcast %cst_212 : f32 to vector<8x256xf32>
    %416 = arith.cmpf ole, %24, %415 : vector<8x256xf32>
    %cst_213 = arith.constant 1.000000e+00 : f32
    %cst_214 = arith.constant 0.000000e+00 : f32
    %417 = vector.broadcast %cst_213 : f32 to vector<8x256xf32>
    %418 = vector.broadcast %cst_214 : f32 to vector<8x256xf32>
    %419 = arith.select %416, %417, %418 : vector<8x256xi1>, vector<8x256xf32>
    %420 = arith.addf %404, %419 : vector<8x256xf32>
    %421 = arith.addf %409, %414 : vector<8x256xf32>
    %422 = arith.subf %420, %421 : vector<8x256xf32>
    %cst_215 = arith.constant dense<0.000000e+00> : vector<8xf32>
    %423 = vector.multi_reduction <add>, %422, %cst_215 [1] : vector<8x256xf32> to vector<8xf32>
    %424 = vector.shape_cast %423 : vector<8xf32> to vector<8x1xf32>
    %cst_216 = arith.constant 0.15419355 : f32
    %425 = vector.broadcast %cst_216 : f32 to vector<8x256xf32>
    %426 = arith.cmpf ole, %0, %425 : vector<8x256xf32>
    %cst_217 = arith.constant 1.000000e+00 : f32
    %cst_218 = arith.constant 0.000000e+00 : f32
    %427 = vector.broadcast %cst_217 : f32 to vector<8x256xf32>
    %428 = vector.broadcast %cst_218 : f32 to vector<8x256xf32>
    %429 = arith.select %426, %427, %428 : vector<8x256xi1>, vector<8x256xf32>
    %cst_219 = arith.constant 0.15419355 : f32
    %430 = vector.broadcast %cst_219 : f32 to vector<8x256xf32>
    %431 = arith.cmpf ole, %21, %430 : vector<8x256xf32>
    %cst_220 = arith.constant 1.000000e+00 : f32
    %cst_221 = arith.constant 0.000000e+00 : f32
    %432 = vector.broadcast %cst_220 : f32 to vector<8x256xf32>
    %433 = vector.broadcast %cst_221 : f32 to vector<8x256xf32>
    %434 = arith.select %431, %432, %433 : vector<8x256xi1>, vector<8x256xf32>
    %cst_222 = arith.constant 0.15419355 : f32
    %435 = vector.broadcast %cst_222 : f32 to vector<8x256xf32>
    %436 = arith.cmpf ole, %22, %435 : vector<8x256xf32>
    %cst_223 = arith.constant 1.000000e+00 : f32
    %cst_224 = arith.constant 0.000000e+00 : f32
    %437 = vector.broadcast %cst_223 : f32 to vector<8x256xf32>
    %438 = vector.broadcast %cst_224 : f32 to vector<8x256xf32>
    %439 = arith.select %436, %437, %438 : vector<8x256xi1>, vector<8x256xf32>
    %cst_225 = arith.constant 0.15419355 : f32
    %440 = vector.broadcast %cst_225 : f32 to vector<8x256xf32>
    %441 = arith.cmpf ole, %24, %440 : vector<8x256xf32>
    %cst_226 = arith.constant 1.000000e+00 : f32
    %cst_227 = arith.constant 0.000000e+00 : f32
    %442 = vector.broadcast %cst_226 : f32 to vector<8x256xf32>
    %443 = vector.broadcast %cst_227 : f32 to vector<8x256xf32>
    %444 = arith.select %441, %442, %443 : vector<8x256xi1>, vector<8x256xf32>
    %445 = arith.addf %429, %444 : vector<8x256xf32>
    %446 = arith.addf %434, %439 : vector<8x256xf32>
    %447 = arith.subf %445, %446 : vector<8x256xf32>
    %cst_228 = arith.constant dense<0.000000e+00> : vector<8xf32>
    %448 = vector.multi_reduction <add>, %447, %cst_228 [1] : vector<8x256xf32> to vector<8xf32>
    %449 = vector.shape_cast %448 : vector<8xf32> to vector<8x1xf32>
    %cst_229 = arith.constant 0.162580654 : f32
    %450 = vector.broadcast %cst_229 : f32 to vector<8x256xf32>
    %451 = arith.cmpf ole, %0, %450 : vector<8x256xf32>
    %cst_230 = arith.constant 1.000000e+00 : f32
    %cst_231 = arith.constant 0.000000e+00 : f32
    %452 = vector.broadcast %cst_230 : f32 to vector<8x256xf32>
    %453 = vector.broadcast %cst_231 : f32 to vector<8x256xf32>
    %454 = arith.select %451, %452, %453 : vector<8x256xi1>, vector<8x256xf32>
    %cst_232 = arith.constant 0.162580654 : f32
    %455 = vector.broadcast %cst_232 : f32 to vector<8x256xf32>
    %456 = arith.cmpf ole, %21, %455 : vector<8x256xf32>
    %cst_233 = arith.constant 1.000000e+00 : f32
    %cst_234 = arith.constant 0.000000e+00 : f32
    %457 = vector.broadcast %cst_233 : f32 to vector<8x256xf32>
    %458 = vector.broadcast %cst_234 : f32 to vector<8x256xf32>
    %459 = arith.select %456, %457, %458 : vector<8x256xi1>, vector<8x256xf32>
    %cst_235 = arith.constant 0.162580654 : f32
    %460 = vector.broadcast %cst_235 : f32 to vector<8x256xf32>
    %461 = arith.cmpf ole, %22, %460 : vector<8x256xf32>
    %cst_236 = arith.constant 1.000000e+00 : f32
    %cst_237 = arith.constant 0.000000e+00 : f32
    %462 = vector.broadcast %cst_236 : f32 to vector<8x256xf32>
    %463 = vector.broadcast %cst_237 : f32 to vector<8x256xf32>
    %464 = arith.select %461, %462, %463 : vector<8x256xi1>, vector<8x256xf32>
    %cst_238 = arith.constant 0.162580654 : f32
    %465 = vector.broadcast %cst_238 : f32 to vector<8x256xf32>
    %466 = arith.cmpf ole, %24, %465 : vector<8x256xf32>
    %cst_239 = arith.constant 1.000000e+00 : f32
    %cst_240 = arith.constant 0.000000e+00 : f32
    %467 = vector.broadcast %cst_239 : f32 to vector<8x256xf32>
    %468 = vector.broadcast %cst_240 : f32 to vector<8x256xf32>
    %469 = arith.select %466, %467, %468 : vector<8x256xi1>, vector<8x256xf32>
    %470 = arith.addf %454, %469 : vector<8x256xf32>
    %471 = arith.addf %459, %464 : vector<8x256xf32>
    %472 = arith.subf %470, %471 : vector<8x256xf32>
    %cst_241 = arith.constant dense<0.000000e+00> : vector<8xf32>
    %473 = vector.multi_reduction <add>, %472, %cst_241 [1] : vector<8x256xf32> to vector<8xf32>
    %474 = vector.shape_cast %473 : vector<8xf32> to vector<8x1xf32>
    %cst_242 = arith.constant 0.170967743 : f32
    %475 = vector.broadcast %cst_242 : f32 to vector<8x256xf32>
    %476 = arith.cmpf ole, %0, %475 : vector<8x256xf32>
    %cst_243 = arith.constant 1.000000e+00 : f32
    %cst_244 = arith.constant 0.000000e+00 : f32
    %477 = vector.broadcast %cst_243 : f32 to vector<8x256xf32>
    %478 = vector.broadcast %cst_244 : f32 to vector<8x256xf32>
    %479 = arith.select %476, %477, %478 : vector<8x256xi1>, vector<8x256xf32>
    %cst_245 = arith.constant 0.170967743 : f32
    %480 = vector.broadcast %cst_245 : f32 to vector<8x256xf32>
    %481 = arith.cmpf ole, %21, %480 : vector<8x256xf32>
    %cst_246 = arith.constant 1.000000e+00 : f32
    %cst_247 = arith.constant 0.000000e+00 : f32
    %482 = vector.broadcast %cst_246 : f32 to vector<8x256xf32>
    %483 = vector.broadcast %cst_247 : f32 to vector<8x256xf32>
    %484 = arith.select %481, %482, %483 : vector<8x256xi1>, vector<8x256xf32>
    %cst_248 = arith.constant 0.170967743 : f32
    %485 = vector.broadcast %cst_248 : f32 to vector<8x256xf32>
    %486 = arith.cmpf ole, %22, %485 : vector<8x256xf32>
    %cst_249 = arith.constant 1.000000e+00 : f32
    %cst_250 = arith.constant 0.000000e+00 : f32
    %487 = vector.broadcast %cst_249 : f32 to vector<8x256xf32>
    %488 = vector.broadcast %cst_250 : f32 to vector<8x256xf32>
    %489 = arith.select %486, %487, %488 : vector<8x256xi1>, vector<8x256xf32>
    %cst_251 = arith.constant 0.170967743 : f32
    %490 = vector.broadcast %cst_251 : f32 to vector<8x256xf32>
    %491 = arith.cmpf ole, %24, %490 : vector<8x256xf32>
    %cst_252 = arith.constant 1.000000e+00 : f32
    %cst_253 = arith.constant 0.000000e+00 : f32
    %492 = vector.broadcast %cst_252 : f32 to vector<8x256xf32>
    %493 = vector.broadcast %cst_253 : f32 to vector<8x256xf32>
    %494 = arith.select %491, %492, %493 : vector<8x256xi1>, vector<8x256xf32>
    %495 = arith.addf %479, %494 : vector<8x256xf32>
    %496 = arith.addf %484, %489 : vector<8x256xf32>
    %497 = arith.subf %495, %496 : vector<8x256xf32>
    %cst_254 = arith.constant dense<0.000000e+00> : vector<8xf32>
    %498 = vector.multi_reduction <add>, %497, %cst_254 [1] : vector<8x256xf32> to vector<8xf32>
    %499 = vector.shape_cast %498 : vector<8xf32> to vector<8x1xf32>
    %cst_255 = arith.constant 0.179354846 : f32
    %500 = vector.broadcast %cst_255 : f32 to vector<8x256xf32>
    %501 = arith.cmpf ole, %0, %500 : vector<8x256xf32>
    %cst_256 = arith.constant 1.000000e+00 : f32
    %cst_257 = arith.constant 0.000000e+00 : f32
    %502 = vector.broadcast %cst_256 : f32 to vector<8x256xf32>
    %503 = vector.broadcast %cst_257 : f32 to vector<8x256xf32>
    %504 = arith.select %501, %502, %503 : vector<8x256xi1>, vector<8x256xf32>
    %cst_258 = arith.constant 0.179354846 : f32
    %505 = vector.broadcast %cst_258 : f32 to vector<8x256xf32>
    %506 = arith.cmpf ole, %21, %505 : vector<8x256xf32>
    %cst_259 = arith.constant 1.000000e+00 : f32
    %cst_260 = arith.constant 0.000000e+00 : f32
    %507 = vector.broadcast %cst_259 : f32 to vector<8x256xf32>
    %508 = vector.broadcast %cst_260 : f32 to vector<8x256xf32>
    %509 = arith.select %506, %507, %508 : vector<8x256xi1>, vector<8x256xf32>
    %cst_261 = arith.constant 0.179354846 : f32
    %510 = vector.broadcast %cst_261 : f32 to vector<8x256xf32>
    %511 = arith.cmpf ole, %22, %510 : vector<8x256xf32>
    %cst_262 = arith.constant 1.000000e+00 : f32
    %cst_263 = arith.constant 0.000000e+00 : f32
    %512 = vector.broadcast %cst_262 : f32 to vector<8x256xf32>
    %513 = vector.broadcast %cst_263 : f32 to vector<8x256xf32>
    %514 = arith.select %511, %512, %513 : vector<8x256xi1>, vector<8x256xf32>
    %cst_264 = arith.constant 0.179354846 : f32
    %515 = vector.broadcast %cst_264 : f32 to vector<8x256xf32>
    %516 = arith.cmpf ole, %24, %515 : vector<8x256xf32>
    %cst_265 = arith.constant 1.000000e+00 : f32
    %cst_266 = arith.constant 0.000000e+00 : f32
    %517 = vector.broadcast %cst_265 : f32 to vector<8x256xf32>
    %518 = vector.broadcast %cst_266 : f32 to vector<8x256xf32>
    %519 = arith.select %516, %517, %518 : vector<8x256xi1>, vector<8x256xf32>
    %520 = arith.addf %504, %519 : vector<8x256xf32>
    %521 = arith.addf %509, %514 : vector<8x256xf32>
    %522 = arith.subf %520, %521 : vector<8x256xf32>
    %cst_267 = arith.constant dense<0.000000e+00> : vector<8xf32>
    %523 = vector.multi_reduction <add>, %522, %cst_267 [1] : vector<8x256xf32> to vector<8xf32>
    %524 = vector.shape_cast %523 : vector<8xf32> to vector<8x1xf32>
    %cst_268 = arith.constant 0.187741935 : f32
    %525 = vector.broadcast %cst_268 : f32 to vector<8x256xf32>
    %526 = arith.cmpf ole, %0, %525 : vector<8x256xf32>
    %cst_269 = arith.constant 1.000000e+00 : f32
    %cst_270 = arith.constant 0.000000e+00 : f32
    %527 = vector.broadcast %cst_269 : f32 to vector<8x256xf32>
    %528 = vector.broadcast %cst_270 : f32 to vector<8x256xf32>
    %529 = arith.select %526, %527, %528 : vector<8x256xi1>, vector<8x256xf32>
    %cst_271 = arith.constant 0.187741935 : f32
    %530 = vector.broadcast %cst_271 : f32 to vector<8x256xf32>
    %531 = arith.cmpf ole, %21, %530 : vector<8x256xf32>
    %cst_272 = arith.constant 1.000000e+00 : f32
    %cst_273 = arith.constant 0.000000e+00 : f32
    %532 = vector.broadcast %cst_272 : f32 to vector<8x256xf32>
    %533 = vector.broadcast %cst_273 : f32 to vector<8x256xf32>
    %534 = arith.select %531, %532, %533 : vector<8x256xi1>, vector<8x256xf32>
    %cst_274 = arith.constant 0.187741935 : f32
    %535 = vector.broadcast %cst_274 : f32 to vector<8x256xf32>
    %536 = arith.cmpf ole, %22, %535 : vector<8x256xf32>
    %cst_275 = arith.constant 1.000000e+00 : f32
    %cst_276 = arith.constant 0.000000e+00 : f32
    %537 = vector.broadcast %cst_275 : f32 to vector<8x256xf32>
    %538 = vector.broadcast %cst_276 : f32 to vector<8x256xf32>
    %539 = arith.select %536, %537, %538 : vector<8x256xi1>, vector<8x256xf32>
    %cst_277 = arith.constant 0.187741935 : f32
    %540 = vector.broadcast %cst_277 : f32 to vector<8x256xf32>
    %541 = arith.cmpf ole, %24, %540 : vector<8x256xf32>
    %cst_278 = arith.constant 1.000000e+00 : f32
    %cst_279 = arith.constant 0.000000e+00 : f32
    %542 = vector.broadcast %cst_278 : f32 to vector<8x256xf32>
    %543 = vector.broadcast %cst_279 : f32 to vector<8x256xf32>
    %544 = arith.select %541, %542, %543 : vector<8x256xi1>, vector<8x256xf32>
    %545 = arith.addf %529, %544 : vector<8x256xf32>
    %546 = arith.addf %534, %539 : vector<8x256xf32>
    %547 = arith.subf %545, %546 : vector<8x256xf32>
    %cst_280 = arith.constant dense<0.000000e+00> : vector<8xf32>
    %548 = vector.multi_reduction <add>, %547, %cst_280 [1] : vector<8x256xf32> to vector<8xf32>
    %549 = vector.shape_cast %548 : vector<8xf32> to vector<8x1xf32>
    %cst_281 = arith.constant 0.196129039 : f32
    %550 = vector.broadcast %cst_281 : f32 to vector<8x256xf32>
    %551 = arith.cmpf ole, %0, %550 : vector<8x256xf32>
    %cst_282 = arith.constant 1.000000e+00 : f32
    %cst_283 = arith.constant 0.000000e+00 : f32
    %552 = vector.broadcast %cst_282 : f32 to vector<8x256xf32>
    %553 = vector.broadcast %cst_283 : f32 to vector<8x256xf32>
    %554 = arith.select %551, %552, %553 : vector<8x256xi1>, vector<8x256xf32>
    %cst_284 = arith.constant 0.196129039 : f32
    %555 = vector.broadcast %cst_284 : f32 to vector<8x256xf32>
    %556 = arith.cmpf ole, %21, %555 : vector<8x256xf32>
    %cst_285 = arith.constant 1.000000e+00 : f32
    %cst_286 = arith.constant 0.000000e+00 : f32
    %557 = vector.broadcast %cst_285 : f32 to vector<8x256xf32>
    %558 = vector.broadcast %cst_286 : f32 to vector<8x256xf32>
    %559 = arith.select %556, %557, %558 : vector<8x256xi1>, vector<8x256xf32>
    %cst_287 = arith.constant 0.196129039 : f32
    %560 = vector.broadcast %cst_287 : f32 to vector<8x256xf32>
    %561 = arith.cmpf ole, %22, %560 : vector<8x256xf32>
    %cst_288 = arith.constant 1.000000e+00 : f32
    %cst_289 = arith.constant 0.000000e+00 : f32
    %562 = vector.broadcast %cst_288 : f32 to vector<8x256xf32>
    %563 = vector.broadcast %cst_289 : f32 to vector<8x256xf32>
    %564 = arith.select %561, %562, %563 : vector<8x256xi1>, vector<8x256xf32>
    %cst_290 = arith.constant 0.196129039 : f32
    %565 = vector.broadcast %cst_290 : f32 to vector<8x256xf32>
    %566 = arith.cmpf ole, %24, %565 : vector<8x256xf32>
    %cst_291 = arith.constant 1.000000e+00 : f32
    %cst_292 = arith.constant 0.000000e+00 : f32
    %567 = vector.broadcast %cst_291 : f32 to vector<8x256xf32>
    %568 = vector.broadcast %cst_292 : f32 to vector<8x256xf32>
    %569 = arith.select %566, %567, %568 : vector<8x256xi1>, vector<8x256xf32>
    %570 = arith.addf %554, %569 : vector<8x256xf32>
    %571 = arith.addf %559, %564 : vector<8x256xf32>
    %572 = arith.subf %570, %571 : vector<8x256xf32>
    %cst_293 = arith.constant dense<0.000000e+00> : vector<8xf32>
    %573 = vector.multi_reduction <add>, %572, %cst_293 [1] : vector<8x256xf32> to vector<8xf32>
    %574 = vector.shape_cast %573 : vector<8xf32> to vector<8x1xf32>
    %cst_294 = arith.constant 0.204516128 : f32
    %575 = vector.broadcast %cst_294 : f32 to vector<8x256xf32>
    %576 = arith.cmpf ole, %0, %575 : vector<8x256xf32>
    %cst_295 = arith.constant 1.000000e+00 : f32
    %cst_296 = arith.constant 0.000000e+00 : f32
    %577 = vector.broadcast %cst_295 : f32 to vector<8x256xf32>
    %578 = vector.broadcast %cst_296 : f32 to vector<8x256xf32>
    %579 = arith.select %576, %577, %578 : vector<8x256xi1>, vector<8x256xf32>
    %cst_297 = arith.constant 0.204516128 : f32
    %580 = vector.broadcast %cst_297 : f32 to vector<8x256xf32>
    %581 = arith.cmpf ole, %21, %580 : vector<8x256xf32>
    %cst_298 = arith.constant 1.000000e+00 : f32
    %cst_299 = arith.constant 0.000000e+00 : f32
    %582 = vector.broadcast %cst_298 : f32 to vector<8x256xf32>
    %583 = vector.broadcast %cst_299 : f32 to vector<8x256xf32>
    %584 = arith.select %581, %582, %583 : vector<8x256xi1>, vector<8x256xf32>
    %cst_300 = arith.constant 0.204516128 : f32
    %585 = vector.broadcast %cst_300 : f32 to vector<8x256xf32>
    %586 = arith.cmpf ole, %22, %585 : vector<8x256xf32>
    %cst_301 = arith.constant 1.000000e+00 : f32
    %cst_302 = arith.constant 0.000000e+00 : f32
    %587 = vector.broadcast %cst_301 : f32 to vector<8x256xf32>
    %588 = vector.broadcast %cst_302 : f32 to vector<8x256xf32>
    %589 = arith.select %586, %587, %588 : vector<8x256xi1>, vector<8x256xf32>
    %cst_303 = arith.constant 0.204516128 : f32
    %590 = vector.broadcast %cst_303 : f32 to vector<8x256xf32>
    %591 = arith.cmpf ole, %24, %590 : vector<8x256xf32>
    %cst_304 = arith.constant 1.000000e+00 : f32
    %cst_305 = arith.constant 0.000000e+00 : f32
    %592 = vector.broadcast %cst_304 : f32 to vector<8x256xf32>
    %593 = vector.broadcast %cst_305 : f32 to vector<8x256xf32>
    %594 = arith.select %591, %592, %593 : vector<8x256xi1>, vector<8x256xf32>
    %595 = arith.addf %579, %594 : vector<8x256xf32>
    %596 = arith.addf %584, %589 : vector<8x256xf32>
    %597 = arith.subf %595, %596 : vector<8x256xf32>
    %cst_306 = arith.constant dense<0.000000e+00> : vector<8xf32>
    %598 = vector.multi_reduction <add>, %597, %cst_306 [1] : vector<8x256xf32> to vector<8xf32>
    %599 = vector.shape_cast %598 : vector<8xf32> to vector<8x1xf32>
    %cst_307 = arith.constant 0.212903231 : f32
    %600 = vector.broadcast %cst_307 : f32 to vector<8x256xf32>
    %601 = arith.cmpf ole, %0, %600 : vector<8x256xf32>
    %cst_308 = arith.constant 1.000000e+00 : f32
    %cst_309 = arith.constant 0.000000e+00 : f32
    %602 = vector.broadcast %cst_308 : f32 to vector<8x256xf32>
    %603 = vector.broadcast %cst_309 : f32 to vector<8x256xf32>
    %604 = arith.select %601, %602, %603 : vector<8x256xi1>, vector<8x256xf32>
    %cst_310 = arith.constant 0.212903231 : f32
    %605 = vector.broadcast %cst_310 : f32 to vector<8x256xf32>
    %606 = arith.cmpf ole, %21, %605 : vector<8x256xf32>
    %cst_311 = arith.constant 1.000000e+00 : f32
    %cst_312 = arith.constant 0.000000e+00 : f32
    %607 = vector.broadcast %cst_311 : f32 to vector<8x256xf32>
    %608 = vector.broadcast %cst_312 : f32 to vector<8x256xf32>
    %609 = arith.select %606, %607, %608 : vector<8x256xi1>, vector<8x256xf32>
    %cst_313 = arith.constant 0.212903231 : f32
    %610 = vector.broadcast %cst_313 : f32 to vector<8x256xf32>
    %611 = arith.cmpf ole, %22, %610 : vector<8x256xf32>
    %cst_314 = arith.constant 1.000000e+00 : f32
    %cst_315 = arith.constant 0.000000e+00 : f32
    %612 = vector.broadcast %cst_314 : f32 to vector<8x256xf32>
    %613 = vector.broadcast %cst_315 : f32 to vector<8x256xf32>
    %614 = arith.select %611, %612, %613 : vector<8x256xi1>, vector<8x256xf32>
    %cst_316 = arith.constant 0.212903231 : f32
    %615 = vector.broadcast %cst_316 : f32 to vector<8x256xf32>
    %616 = arith.cmpf ole, %24, %615 : vector<8x256xf32>
    %cst_317 = arith.constant 1.000000e+00 : f32
    %cst_318 = arith.constant 0.000000e+00 : f32
    %617 = vector.broadcast %cst_317 : f32 to vector<8x256xf32>
    %618 = vector.broadcast %cst_318 : f32 to vector<8x256xf32>
    %619 = arith.select %616, %617, %618 : vector<8x256xi1>, vector<8x256xf32>
    %620 = arith.addf %604, %619 : vector<8x256xf32>
    %621 = arith.addf %609, %614 : vector<8x256xf32>
    %622 = arith.subf %620, %621 : vector<8x256xf32>
    %cst_319 = arith.constant dense<0.000000e+00> : vector<8xf32>
    %623 = vector.multi_reduction <add>, %622, %cst_319 [1] : vector<8x256xf32> to vector<8xf32>
    %624 = vector.shape_cast %623 : vector<8xf32> to vector<8x1xf32>
    %cst_320 = arith.constant 0.221290335 : f32
    %625 = vector.broadcast %cst_320 : f32 to vector<8x256xf32>
    %626 = arith.cmpf ole, %0, %625 : vector<8x256xf32>
    %cst_321 = arith.constant 1.000000e+00 : f32
    %cst_322 = arith.constant 0.000000e+00 : f32
    %627 = vector.broadcast %cst_321 : f32 to vector<8x256xf32>
    %628 = vector.broadcast %cst_322 : f32 to vector<8x256xf32>
    %629 = arith.select %626, %627, %628 : vector<8x256xi1>, vector<8x256xf32>
    %cst_323 = arith.constant 0.221290335 : f32
    %630 = vector.broadcast %cst_323 : f32 to vector<8x256xf32>
    %631 = arith.cmpf ole, %21, %630 : vector<8x256xf32>
    %cst_324 = arith.constant 1.000000e+00 : f32
    %cst_325 = arith.constant 0.000000e+00 : f32
    %632 = vector.broadcast %cst_324 : f32 to vector<8x256xf32>
    %633 = vector.broadcast %cst_325 : f32 to vector<8x256xf32>
    %634 = arith.select %631, %632, %633 : vector<8x256xi1>, vector<8x256xf32>
    %cst_326 = arith.constant 0.221290335 : f32
    %635 = vector.broadcast %cst_326 : f32 to vector<8x256xf32>
    %636 = arith.cmpf ole, %22, %635 : vector<8x256xf32>
    %cst_327 = arith.constant 1.000000e+00 : f32
    %cst_328 = arith.constant 0.000000e+00 : f32
    %637 = vector.broadcast %cst_327 : f32 to vector<8x256xf32>
    %638 = vector.broadcast %cst_328 : f32 to vector<8x256xf32>
    %639 = arith.select %636, %637, %638 : vector<8x256xi1>, vector<8x256xf32>
    %cst_329 = arith.constant 0.221290335 : f32
    %640 = vector.broadcast %cst_329 : f32 to vector<8x256xf32>
    %641 = arith.cmpf ole, %24, %640 : vector<8x256xf32>
    %cst_330 = arith.constant 1.000000e+00 : f32
    %cst_331 = arith.constant 0.000000e+00 : f32
    %642 = vector.broadcast %cst_330 : f32 to vector<8x256xf32>
    %643 = vector.broadcast %cst_331 : f32 to vector<8x256xf32>
    %644 = arith.select %641, %642, %643 : vector<8x256xi1>, vector<8x256xf32>
    %645 = arith.addf %629, %644 : vector<8x256xf32>
    %646 = arith.addf %634, %639 : vector<8x256xf32>
    %647 = arith.subf %645, %646 : vector<8x256xf32>
    %cst_332 = arith.constant dense<0.000000e+00> : vector<8xf32>
    %648 = vector.multi_reduction <add>, %647, %cst_332 [1] : vector<8x256xf32> to vector<8xf32>
    %649 = vector.shape_cast %648 : vector<8xf32> to vector<8x1xf32>
    %cst_333 = arith.constant 0.229677424 : f32
    %650 = vector.broadcast %cst_333 : f32 to vector<8x256xf32>
    %651 = arith.cmpf ole, %0, %650 : vector<8x256xf32>
    %cst_334 = arith.constant 1.000000e+00 : f32
    %cst_335 = arith.constant 0.000000e+00 : f32
    %652 = vector.broadcast %cst_334 : f32 to vector<8x256xf32>
    %653 = vector.broadcast %cst_335 : f32 to vector<8x256xf32>
    %654 = arith.select %651, %652, %653 : vector<8x256xi1>, vector<8x256xf32>
    %cst_336 = arith.constant 0.229677424 : f32
    %655 = vector.broadcast %cst_336 : f32 to vector<8x256xf32>
    %656 = arith.cmpf ole, %21, %655 : vector<8x256xf32>
    %cst_337 = arith.constant 1.000000e+00 : f32
    %cst_338 = arith.constant 0.000000e+00 : f32
    %657 = vector.broadcast %cst_337 : f32 to vector<8x256xf32>
    %658 = vector.broadcast %cst_338 : f32 to vector<8x256xf32>
    %659 = arith.select %656, %657, %658 : vector<8x256xi1>, vector<8x256xf32>
    %cst_339 = arith.constant 0.229677424 : f32
    %660 = vector.broadcast %cst_339 : f32 to vector<8x256xf32>
    %661 = arith.cmpf ole, %22, %660 : vector<8x256xf32>
    %cst_340 = arith.constant 1.000000e+00 : f32
    %cst_341 = arith.constant 0.000000e+00 : f32
    %662 = vector.broadcast %cst_340 : f32 to vector<8x256xf32>
    %663 = vector.broadcast %cst_341 : f32 to vector<8x256xf32>
    %664 = arith.select %661, %662, %663 : vector<8x256xi1>, vector<8x256xf32>
    %cst_342 = arith.constant 0.229677424 : f32
    %665 = vector.broadcast %cst_342 : f32 to vector<8x256xf32>
    %666 = arith.cmpf ole, %24, %665 : vector<8x256xf32>
    %cst_343 = arith.constant 1.000000e+00 : f32
    %cst_344 = arith.constant 0.000000e+00 : f32
    %667 = vector.broadcast %cst_343 : f32 to vector<8x256xf32>
    %668 = vector.broadcast %cst_344 : f32 to vector<8x256xf32>
    %669 = arith.select %666, %667, %668 : vector<8x256xi1>, vector<8x256xf32>
    %670 = arith.addf %654, %669 : vector<8x256xf32>
    %671 = arith.addf %659, %664 : vector<8x256xf32>
    %672 = arith.subf %670, %671 : vector<8x256xf32>
    %cst_345 = arith.constant dense<0.000000e+00> : vector<8xf32>
    %673 = vector.multi_reduction <add>, %672, %cst_345 [1] : vector<8x256xf32> to vector<8xf32>
    %674 = vector.shape_cast %673 : vector<8xf32> to vector<8x1xf32>
    %cst_346 = arith.constant 0.238064528 : f32
    %675 = vector.broadcast %cst_346 : f32 to vector<8x256xf32>
    %676 = arith.cmpf ole, %0, %675 : vector<8x256xf32>
    %cst_347 = arith.constant 1.000000e+00 : f32
    %cst_348 = arith.constant 0.000000e+00 : f32
    %677 = vector.broadcast %cst_347 : f32 to vector<8x256xf32>
    %678 = vector.broadcast %cst_348 : f32 to vector<8x256xf32>
    %679 = arith.select %676, %677, %678 : vector<8x256xi1>, vector<8x256xf32>
    %cst_349 = arith.constant 0.238064528 : f32
    %680 = vector.broadcast %cst_349 : f32 to vector<8x256xf32>
    %681 = arith.cmpf ole, %21, %680 : vector<8x256xf32>
    %cst_350 = arith.constant 1.000000e+00 : f32
    %cst_351 = arith.constant 0.000000e+00 : f32
    %682 = vector.broadcast %cst_350 : f32 to vector<8x256xf32>
    %683 = vector.broadcast %cst_351 : f32 to vector<8x256xf32>
    %684 = arith.select %681, %682, %683 : vector<8x256xi1>, vector<8x256xf32>
    %cst_352 = arith.constant 0.238064528 : f32
    %685 = vector.broadcast %cst_352 : f32 to vector<8x256xf32>
    %686 = arith.cmpf ole, %22, %685 : vector<8x256xf32>
    %cst_353 = arith.constant 1.000000e+00 : f32
    %cst_354 = arith.constant 0.000000e+00 : f32
    %687 = vector.broadcast %cst_353 : f32 to vector<8x256xf32>
    %688 = vector.broadcast %cst_354 : f32 to vector<8x256xf32>
    %689 = arith.select %686, %687, %688 : vector<8x256xi1>, vector<8x256xf32>
    %cst_355 = arith.constant 0.238064528 : f32
    %690 = vector.broadcast %cst_355 : f32 to vector<8x256xf32>
    %691 = arith.cmpf ole, %24, %690 : vector<8x256xf32>
    %cst_356 = arith.constant 1.000000e+00 : f32
    %cst_357 = arith.constant 0.000000e+00 : f32
    %692 = vector.broadcast %cst_356 : f32 to vector<8x256xf32>
    %693 = vector.broadcast %cst_357 : f32 to vector<8x256xf32>
    %694 = arith.select %691, %692, %693 : vector<8x256xi1>, vector<8x256xf32>
    %695 = arith.addf %679, %694 : vector<8x256xf32>
    %696 = arith.addf %684, %689 : vector<8x256xf32>
    %697 = arith.subf %695, %696 : vector<8x256xf32>
    %cst_358 = arith.constant dense<0.000000e+00> : vector<8xf32>
    %698 = vector.multi_reduction <add>, %697, %cst_358 [1] : vector<8x256xf32> to vector<8xf32>
    %699 = vector.shape_cast %698 : vector<8xf32> to vector<8x1xf32>
    %cst_359 = arith.constant 0.246451616 : f32
    %700 = vector.broadcast %cst_359 : f32 to vector<8x256xf32>
    %701 = arith.cmpf ole, %0, %700 : vector<8x256xf32>
    %cst_360 = arith.constant 1.000000e+00 : f32
    %cst_361 = arith.constant 0.000000e+00 : f32
    %702 = vector.broadcast %cst_360 : f32 to vector<8x256xf32>
    %703 = vector.broadcast %cst_361 : f32 to vector<8x256xf32>
    %704 = arith.select %701, %702, %703 : vector<8x256xi1>, vector<8x256xf32>
    %cst_362 = arith.constant 0.246451616 : f32
    %705 = vector.broadcast %cst_362 : f32 to vector<8x256xf32>
    %706 = arith.cmpf ole, %21, %705 : vector<8x256xf32>
    %cst_363 = arith.constant 1.000000e+00 : f32
    %cst_364 = arith.constant 0.000000e+00 : f32
    %707 = vector.broadcast %cst_363 : f32 to vector<8x256xf32>
    %708 = vector.broadcast %cst_364 : f32 to vector<8x256xf32>
    %709 = arith.select %706, %707, %708 : vector<8x256xi1>, vector<8x256xf32>
    %cst_365 = arith.constant 0.246451616 : f32
    %710 = vector.broadcast %cst_365 : f32 to vector<8x256xf32>
    %711 = arith.cmpf ole, %22, %710 : vector<8x256xf32>
    %cst_366 = arith.constant 1.000000e+00 : f32
    %cst_367 = arith.constant 0.000000e+00 : f32
    %712 = vector.broadcast %cst_366 : f32 to vector<8x256xf32>
    %713 = vector.broadcast %cst_367 : f32 to vector<8x256xf32>
    %714 = arith.select %711, %712, %713 : vector<8x256xi1>, vector<8x256xf32>
    %cst_368 = arith.constant 0.246451616 : f32
    %715 = vector.broadcast %cst_368 : f32 to vector<8x256xf32>
    %716 = arith.cmpf ole, %24, %715 : vector<8x256xf32>
    %cst_369 = arith.constant 1.000000e+00 : f32
    %cst_370 = arith.constant 0.000000e+00 : f32
    %717 = vector.broadcast %cst_369 : f32 to vector<8x256xf32>
    %718 = vector.broadcast %cst_370 : f32 to vector<8x256xf32>
    %719 = arith.select %716, %717, %718 : vector<8x256xi1>, vector<8x256xf32>
    %720 = arith.addf %704, %719 : vector<8x256xf32>
    %721 = arith.addf %709, %714 : vector<8x256xf32>
    %722 = arith.subf %720, %721 : vector<8x256xf32>
    %cst_371 = arith.constant dense<0.000000e+00> : vector<8xf32>
    %723 = vector.multi_reduction <add>, %722, %cst_371 [1] : vector<8x256xf32> to vector<8xf32>
    %724 = vector.shape_cast %723 : vector<8xf32> to vector<8x1xf32>
    %cst_372 = arith.constant 0.254838735 : f32
    %725 = vector.broadcast %cst_372 : f32 to vector<8x256xf32>
    %726 = arith.cmpf ole, %0, %725 : vector<8x256xf32>
    %cst_373 = arith.constant 1.000000e+00 : f32
    %cst_374 = arith.constant 0.000000e+00 : f32
    %727 = vector.broadcast %cst_373 : f32 to vector<8x256xf32>
    %728 = vector.broadcast %cst_374 : f32 to vector<8x256xf32>
    %729 = arith.select %726, %727, %728 : vector<8x256xi1>, vector<8x256xf32>
    %cst_375 = arith.constant 0.254838735 : f32
    %730 = vector.broadcast %cst_375 : f32 to vector<8x256xf32>
    %731 = arith.cmpf ole, %21, %730 : vector<8x256xf32>
    %cst_376 = arith.constant 1.000000e+00 : f32
    %cst_377 = arith.constant 0.000000e+00 : f32
    %732 = vector.broadcast %cst_376 : f32 to vector<8x256xf32>
    %733 = vector.broadcast %cst_377 : f32 to vector<8x256xf32>
    %734 = arith.select %731, %732, %733 : vector<8x256xi1>, vector<8x256xf32>
    %cst_378 = arith.constant 0.254838735 : f32
    %735 = vector.broadcast %cst_378 : f32 to vector<8x256xf32>
    %736 = arith.cmpf ole, %22, %735 : vector<8x256xf32>
    %cst_379 = arith.constant 1.000000e+00 : f32
    %cst_380 = arith.constant 0.000000e+00 : f32
    %737 = vector.broadcast %cst_379 : f32 to vector<8x256xf32>
    %738 = vector.broadcast %cst_380 : f32 to vector<8x256xf32>
    %739 = arith.select %736, %737, %738 : vector<8x256xi1>, vector<8x256xf32>
    %cst_381 = arith.constant 0.254838735 : f32
    %740 = vector.broadcast %cst_381 : f32 to vector<8x256xf32>
    %741 = arith.cmpf ole, %24, %740 : vector<8x256xf32>
    %cst_382 = arith.constant 1.000000e+00 : f32
    %cst_383 = arith.constant 0.000000e+00 : f32
    %742 = vector.broadcast %cst_382 : f32 to vector<8x256xf32>
    %743 = vector.broadcast %cst_383 : f32 to vector<8x256xf32>
    %744 = arith.select %741, %742, %743 : vector<8x256xi1>, vector<8x256xf32>
    %745 = arith.addf %729, %744 : vector<8x256xf32>
    %746 = arith.addf %734, %739 : vector<8x256xf32>
    %747 = arith.subf %745, %746 : vector<8x256xf32>
    %cst_384 = arith.constant dense<0.000000e+00> : vector<8xf32>
    %748 = vector.multi_reduction <add>, %747, %cst_384 [1] : vector<8x256xf32> to vector<8xf32>
    %749 = vector.shape_cast %748 : vector<8xf32> to vector<8x1xf32>
    %cst_385 = arith.constant 0.263225824 : f32
    %750 = vector.broadcast %cst_385 : f32 to vector<8x256xf32>
    %751 = arith.cmpf ole, %0, %750 : vector<8x256xf32>
    %cst_386 = arith.constant 1.000000e+00 : f32
    %cst_387 = arith.constant 0.000000e+00 : f32
    %752 = vector.broadcast %cst_386 : f32 to vector<8x256xf32>
    %753 = vector.broadcast %cst_387 : f32 to vector<8x256xf32>
    %754 = arith.select %751, %752, %753 : vector<8x256xi1>, vector<8x256xf32>
    %cst_388 = arith.constant 0.263225824 : f32
    %755 = vector.broadcast %cst_388 : f32 to vector<8x256xf32>
    %756 = arith.cmpf ole, %21, %755 : vector<8x256xf32>
    %cst_389 = arith.constant 1.000000e+00 : f32
    %cst_390 = arith.constant 0.000000e+00 : f32
    %757 = vector.broadcast %cst_389 : f32 to vector<8x256xf32>
    %758 = vector.broadcast %cst_390 : f32 to vector<8x256xf32>
    %759 = arith.select %756, %757, %758 : vector<8x256xi1>, vector<8x256xf32>
    %cst_391 = arith.constant 0.263225824 : f32
    %760 = vector.broadcast %cst_391 : f32 to vector<8x256xf32>
    %761 = arith.cmpf ole, %22, %760 : vector<8x256xf32>
    %cst_392 = arith.constant 1.000000e+00 : f32
    %cst_393 = arith.constant 0.000000e+00 : f32
    %762 = vector.broadcast %cst_392 : f32 to vector<8x256xf32>
    %763 = vector.broadcast %cst_393 : f32 to vector<8x256xf32>
    %764 = arith.select %761, %762, %763 : vector<8x256xi1>, vector<8x256xf32>
    %cst_394 = arith.constant 0.263225824 : f32
    %765 = vector.broadcast %cst_394 : f32 to vector<8x256xf32>
    %766 = arith.cmpf ole, %24, %765 : vector<8x256xf32>
    %cst_395 = arith.constant 1.000000e+00 : f32
    %cst_396 = arith.constant 0.000000e+00 : f32
    %767 = vector.broadcast %cst_395 : f32 to vector<8x256xf32>
    %768 = vector.broadcast %cst_396 : f32 to vector<8x256xf32>
    %769 = arith.select %766, %767, %768 : vector<8x256xi1>, vector<8x256xf32>
    %770 = arith.addf %754, %769 : vector<8x256xf32>
    %771 = arith.addf %759, %764 : vector<8x256xf32>
    %772 = arith.subf %770, %771 : vector<8x256xf32>
    %cst_397 = arith.constant dense<0.000000e+00> : vector<8xf32>
    %773 = vector.multi_reduction <add>, %772, %cst_397 [1] : vector<8x256xf32> to vector<8xf32>
    %774 = vector.shape_cast %773 : vector<8xf32> to vector<8x1xf32>
    %cst_398 = arith.constant 0.271612912 : f32
    %775 = vector.broadcast %cst_398 : f32 to vector<8x256xf32>
    %776 = arith.cmpf ole, %0, %775 : vector<8x256xf32>
    %cst_399 = arith.constant 1.000000e+00 : f32
    %cst_400 = arith.constant 0.000000e+00 : f32
    %777 = vector.broadcast %cst_399 : f32 to vector<8x256xf32>
    %778 = vector.broadcast %cst_400 : f32 to vector<8x256xf32>
    %779 = arith.select %776, %777, %778 : vector<8x256xi1>, vector<8x256xf32>
    %cst_401 = arith.constant 0.271612912 : f32
    %780 = vector.broadcast %cst_401 : f32 to vector<8x256xf32>
    %781 = arith.cmpf ole, %21, %780 : vector<8x256xf32>
    %cst_402 = arith.constant 1.000000e+00 : f32
    %cst_403 = arith.constant 0.000000e+00 : f32
    %782 = vector.broadcast %cst_402 : f32 to vector<8x256xf32>
    %783 = vector.broadcast %cst_403 : f32 to vector<8x256xf32>
    %784 = arith.select %781, %782, %783 : vector<8x256xi1>, vector<8x256xf32>
    %cst_404 = arith.constant 0.271612912 : f32
    %785 = vector.broadcast %cst_404 : f32 to vector<8x256xf32>
    %786 = arith.cmpf ole, %22, %785 : vector<8x256xf32>
    %cst_405 = arith.constant 1.000000e+00 : f32
    %cst_406 = arith.constant 0.000000e+00 : f32
    %787 = vector.broadcast %cst_405 : f32 to vector<8x256xf32>
    %788 = vector.broadcast %cst_406 : f32 to vector<8x256xf32>
    %789 = arith.select %786, %787, %788 : vector<8x256xi1>, vector<8x256xf32>
    %cst_407 = arith.constant 0.271612912 : f32
    %790 = vector.broadcast %cst_407 : f32 to vector<8x256xf32>
    %791 = arith.cmpf ole, %24, %790 : vector<8x256xf32>
    %cst_408 = arith.constant 1.000000e+00 : f32
    %cst_409 = arith.constant 0.000000e+00 : f32
    %792 = vector.broadcast %cst_408 : f32 to vector<8x256xf32>
    %793 = vector.broadcast %cst_409 : f32 to vector<8x256xf32>
    %794 = arith.select %791, %792, %793 : vector<8x256xi1>, vector<8x256xf32>
    %795 = arith.addf %779, %794 : vector<8x256xf32>
    %796 = arith.addf %784, %789 : vector<8x256xf32>
    %797 = arith.subf %795, %796 : vector<8x256xf32>
    %cst_410 = arith.constant dense<0.000000e+00> : vector<8xf32>
    %798 = vector.multi_reduction <add>, %797, %cst_410 [1] : vector<8x256xf32> to vector<8xf32>
    %799 = vector.shape_cast %798 : vector<8xf32> to vector<8x1xf32>
    %cst_411 = arith.constant 0.280000031 : f32
    %800 = vector.broadcast %cst_411 : f32 to vector<8x256xf32>
    %801 = arith.cmpf ole, %0, %800 : vector<8x256xf32>
    %cst_412 = arith.constant 1.000000e+00 : f32
    %cst_413 = arith.constant 0.000000e+00 : f32
    %802 = vector.broadcast %cst_412 : f32 to vector<8x256xf32>
    %803 = vector.broadcast %cst_413 : f32 to vector<8x256xf32>
    %804 = arith.select %801, %802, %803 : vector<8x256xi1>, vector<8x256xf32>
    %cst_414 = arith.constant 0.280000031 : f32
    %805 = vector.broadcast %cst_414 : f32 to vector<8x256xf32>
    %806 = arith.cmpf ole, %21, %805 : vector<8x256xf32>
    %cst_415 = arith.constant 1.000000e+00 : f32
    %cst_416 = arith.constant 0.000000e+00 : f32
    %807 = vector.broadcast %cst_415 : f32 to vector<8x256xf32>
    %808 = vector.broadcast %cst_416 : f32 to vector<8x256xf32>
    %809 = arith.select %806, %807, %808 : vector<8x256xi1>, vector<8x256xf32>
    %cst_417 = arith.constant 0.280000031 : f32
    %810 = vector.broadcast %cst_417 : f32 to vector<8x256xf32>
    %811 = arith.cmpf ole, %22, %810 : vector<8x256xf32>
    %cst_418 = arith.constant 1.000000e+00 : f32
    %cst_419 = arith.constant 0.000000e+00 : f32
    %812 = vector.broadcast %cst_418 : f32 to vector<8x256xf32>
    %813 = vector.broadcast %cst_419 : f32 to vector<8x256xf32>
    %814 = arith.select %811, %812, %813 : vector<8x256xi1>, vector<8x256xf32>
    %cst_420 = arith.constant 0.280000031 : f32
    %815 = vector.broadcast %cst_420 : f32 to vector<8x256xf32>
    %816 = arith.cmpf ole, %24, %815 : vector<8x256xf32>
    %cst_421 = arith.constant 1.000000e+00 : f32
    %cst_422 = arith.constant 0.000000e+00 : f32
    %817 = vector.broadcast %cst_421 : f32 to vector<8x256xf32>
    %818 = vector.broadcast %cst_422 : f32 to vector<8x256xf32>
    %819 = arith.select %816, %817, %818 : vector<8x256xi1>, vector<8x256xf32>
    %820 = arith.addf %804, %819 : vector<8x256xf32>
    %821 = arith.addf %809, %814 : vector<8x256xf32>
    %822 = arith.subf %820, %821 : vector<8x256xf32>
    %cst_423 = arith.constant dense<0.000000e+00> : vector<8xf32>
    %823 = vector.multi_reduction <add>, %822, %cst_423 [1] : vector<8x256xf32> to vector<8xf32>
    %824 = vector.shape_cast %823 : vector<8xf32> to vector<8x1xf32>
    %825 = tpu.concatenate %49, %74, %99, %124, %149, %174, %199, %224, %249, %274, %299, %324, %349, %374, %399, %424 in 1 : vector<8x1xf32>, vector<8x1xf32>, vector<8x1xf32>, vector<8x1xf32>, vector<8x1xf32>, vector<8x1xf32>, vector<8x1xf32>, vector<8x1xf32>, vector<8x1xf32>, vector<8x1xf32>, vector<8x1xf32>, vector<8x1xf32>, vector<8x1xf32>, vector<8x1xf32>, vector<8x1xf32>, vector<8x1xf32> -> vector<8x16xf32>
    %826 = tpu.concatenate %449, %474, %499, %524, %549, %574, %599, %624, %649, %674, %699, %724, %749, %774, %799, %824 in 1 : vector<8x1xf32>, vector<8x1xf32>, vector<8x1xf32>, vector<8x1xf32>, vector<8x1xf32>, vector<8x1xf32>, vector<8x1xf32>, vector<8x1xf32>, vector<8x1xf32>, vector<8x1xf32>, vector<8x1xf32>, vector<8x1xf32>, vector<8x1xf32>, vector<8x1xf32>, vector<8x1xf32>, vector<8x1xf32> -> vector<8x16xf32>
    %827 = tpu.concatenate %825, %826 in 1 : vector<8x16xf32>, vector<8x16xf32> -> vector<8x32xf32>
    %c0_424 = arith.constant 0 : index
    %c0_425 = arith.constant 0 : index
    %828 = vector.load %arg3[%c0_424, %c0_425] : memref<8x32xf32, #tpu.memory_space<vmem>>, vector<8x32xf32>
    tpu.vector_store %arg3[%c0_424, %c0_425], %827 {strides = array<i32>} : memref<8x32xf32, #tpu.memory_space<vmem>>, vector<8x32xf32>,
    return
  }
  func.func @transform_0(%arg0: i32) -> (i32, i32) {
    %c0_i32 = arith.constant 0 : i32
    %c0_i32_0 = arith.constant 0 : i32
    return %arg0, %c0_i32 : i32, i32
  }
  func.func @transform_1(%arg0: i32) -> (i32, i32) {
    %c0_i32 = arith.constant 0 : i32
    %c0_i32_0 = arith.constant 0 : i32
    %c0_i32_1 = arith.constant 0 : i32
    return %c0_i32, %c0_i32_0 : i32, i32
  }
  func.func @transform_2(%arg0: i32) -> (i32, i32) {
    %c0_i32 = arith.constant 0 : i32
    %c0_i32_0 = arith.constant 0 : i32
    return %arg0, %c0_i32 : i32, i32
  }
}

</mosaic_0001>

<bundles_post_ra>
// kernel: tpu_custom_call.1
= control target key start
LH: loop header
LB: loop body
LE: loop exit
PB: predicated region body
PF: predicated region fallthrough
CT: control target
= control target key end

     0   :  { %7 = vsyncpa [#allocation3], 0  ;;  %s1863_s0 = inlined_call_operand.hbm [shape: f32[8,256], index: 0, kind: input, shape index: {}]   ;;  %s1864_s1 = inlined_call_operand.vmem [shape: f32[1,256], index: 1, kind: input, shape index: {}]   ;;  %s1865_s2 = inlined_call_operand.hbm [shape: f32[8,32], index: 2, kind: output, shape index: {}]  }
   0x1   :  { %8 = vsyncpa [#allocation4], 0  ;;  %s1006_s9 = smov [#allocation2]   ;;  %s958_s13 = scalar_lea.hbm %s1863_s0, 256 }
   0x2   :  { %s15_s10 = sshll.u32 %s1006_s9, 4  ;;  %p959_p0 = scmp.ne.s32.totalorder %s1863_s0, %s958_s13  ;;  %s16_s10 = int_to_ptr.vmem [resolvable:$true] %s15_s10 }
   0x3   :  { %p962_p1 = scmp.lt.u32.totalorder %s958_s13, %s1863_s0 }
   0x5   :  { %p964_p2 = pnand %p962_p1, %p959_p0 }
   0x7   :  { %967 = shalt.err (!%p964_p2)
}
   0x8   :  { %s968_s18 = scalar_lea.vmem %s16_s10, 256  ;;  %p973_p4 = scmp.lt.s32.totalorder %s16_s10, %s16_s10 }
   0x9   :  { %p969_p3 = scmp.ne.s32.totalorder %s16_s10, %s968_s18  ;;  %p974_p5 = scmp.lt.s32.totalorder %s968_s18, %s968_s18 }
   0xb   :  { %p975_p6 = por %p974_p5, %p973_p4 }
   0xd   :  { %p976_p7 = pnand %p975_p6, %p969_p3 }
   0xf   :  { %979 = shalt.err (!%p976_p7)
}
  0x10   :  { %18 = dma.hbm_to_vmem [thread:$0]  %s1863_s0, 256, %s16_s10, [#allocation3]  }
  0x11   :  { %1002 = dma.done.wait [#allocation3], 256  }
  0x12   :  { %1003 = vsyncadd [#allocation3], 4294967040  ;;  %v1041_v0 = vld [vmem:[#allocation2] sm:$0xff]  ;;  %s1007_s21 = smov 111   ;;  %s1008_s22 = smov 127   ;;  %v1045_v1 = vld [vmem:[#allocation2 + $0x8] sm:$0xff]  ;;  %v40_v2 = vlaneseq }
  0x13   :  { %61 = vrot.lane.b32.xlu1 %v1041_v0, %s1007_s21  ;;  %30 = vrot.lane.b32.xlu0 %v1041_v0, %s1008_s22  ;;  %s1009_s23 = smov 112   ;;  %v26_v3 = vld [vmem:[%s1864_s1] sm:$0x3]  ;;  %v1010_v6 = vmov 0   ;;  %vm505_vm1 = vcmp.le.f32.partialorder %v1041_v0, 0.16258065 }
  0x14   :  { %v41_v4 = vshrl.u32 %v40_v2, 7  ;;  %vm27_vm0 = vcmp.gt.f32.partialorder %v26_v3, 0.5  ;;  %vm506_vm2 = vcmp.le.f32.partialorder %v1045_v1, 0.16258065  ;;  %vm480_vm3 = vcmp.le.f32.partialorder %v1041_v0, 0.15419355 }
  0x15   :  { %v39_v7 = vsel %vm27_vm0, 1, %v1010_v6  ;;  %vm481_vm4 = vcmp.le.f32.partialorder %v1045_v1, 0.15419355  ;;  %vm580_vm5 = vcmp.le.f32.partialorder %v1041_v0, 0.18774194  ;;  %vm65_vm13 = vcmask 908288  }
  0x16   :  { %v42_v5 = vsub.s32 0, %v41_v4  ;;  %v46_v8 = vsub.s32 1, %v41_v4  ;;  %vm581_vm6 = vcmp.le.f32.partialorder %v1045_v1, 0.18774194  ;;  %vm530_vm7 = vcmp.le.f32.partialorder %v1041_v0, 0.17096774 }
  0x17   :  { %63 = vrot.lane.b32.xlu1 %v1045_v1, %s1007_s21  ;;  %32 = vrot.lane.b32.xlu0 %v1045_v1, %s1008_s22  ;;  %vm531_vm8 = vcmp.le.f32.partialorder %v1045_v1, 0.17096774  ;;  %vm630_vm9 = vcmp.le.f32.partialorder %v1041_v0, 0.20451613  ;;  %vm631_vm10 = vcmp.le.f32.partialorder %v1045_v1, 0.20451613 }
  0x18   :  { %v1057_v9 = vrot.slane %v39_v7, %v42_v5  ;;  %v1062_v10 = vrot.slane %v39_v7, %v46_v8  ;;  %vm555_vm11 = vcmp.le.f32.partialorder %v1041_v0, 0.17935485  ;;  %vm556_vm12 = vcmp.le.f32.partialorder %v1045_v1, 0.17935485  ;;  %s1012_s1 = smov 16   ;;  %s1013_s25 = smov [#allocation5]  }
  0x19   :  { %vm34_vm14 = vcmask 1039360   ;;  %v1011_v11 = vmov 0.0   ;;  %s939_s26 = sshll.u32 %s1013_s25, 4  ;;  %s940_s26 = int_to_ptr.vmem [resolvable:$true] %s939_s26 }
  0x1a   :  { %v1073_v12 = vsel %vm505_vm1, 1.0, %v1011_v11  ;;  %v1078_v13 = vsel %vm506_vm2, 1.0, %v1011_v11  ;;  %v1083_v14 = vsel %vm480_vm3, 1.0, %v1011_v11  ;;  %v1088_v15 = vsel %vm481_vm4, 1.0, %v1011_v11  ;;  %s980_s27 = scalar_lea.vmem %s940_s26, 128  ;;  %p985_p9 = scmp.lt.s32.totalorder %s940_s26, %s940_s26 }
  0x1b   :  { %54 = vrot.lane.b32.xlu1 %v1045_v1, %s1009_s23  ;;  %52 = vrot.lane.b32.xlu0 %v1041_v0, %s1009_s23  ;;  %vm48_vm15 = vcmp.eq.s32.totalorder %v1057_v9, 1  ;;  %v1094_v16 = vsel %vm580_vm5, 1.0, %v1011_v11  ;;  %v1099_v17 = vsel %vm581_vm6, 1.0, %v1011_v11  ;;  %v1104_v18 = vsel %vm530_vm7, 1.0, %v1011_v11  ;;  %p981_p8 = scmp.ne.s32.totalorder %s940_s26, %s980_s27  ;;  %p986_p10 = scmp.lt.s32.totalorder %s980_s27, %s980_s27 }
  0x1c   :  { %v1109_v19 = vsel %vm531_vm8, 1.0, %v1011_v11  ;;  %vm49_vm0 = vcmp.eq.s32.totalorder %v1062_v10, 1  ;;  %v1115_v20 = vsel %vm630_vm9, 1.0, %v1011_v11  ;;  %v1120_v21 = vsel %vm631_vm10, 1.0, %v1011_v11 }
  0x1d   :  { %v1125_v22 = vsel %vm555_vm11, 1.0, %v1011_v11  ;;  %v1130_v23 = vsel %vm556_vm12, 1.0, %v1011_v11  ;;  %vm680_vm1 = vcmp.le.f32.partialorder %v1041_v0, 0.22129034  ;;  %vm681_vm2 = vcmp.le.f32.partialorder %v1045_v1, 0.22129034  ;;  %p987_p11 = por %p986_p10, %p985_p9 }
  0x1e   :  { %vm605_vm3 = vcmp.le.f32.partialorder %v1041_v0, 0.19612904  ;;  %vm56_vm4 = vcmask 916480   ;;  %vm606_vm5 = vcmp.le.f32.partialorder %v1045_v1, 0.19612904  ;;  %v1142_v26 = vsel %vm680_vm1, 1.0, %v1011_v11 }
  0x1f   :  { %vm730_vm6 = vcmp.le.f32.partialorder %v1041_v0, 0.23806453  ;;  %vm731_vm7 = vcmp.le.f32.partialorder %v1045_v1, 0.23806453  ;;  %vm655_vm8 = vcmp.le.f32.partialorder %v1041_v0, 0.21290323  ;;  %p988_p12 = pnand %p987_p11, %p981_p8 }
  0x20   :  { %vm656_vm9 = vcmp.le.f32.partialorder %v1045_v1, 0.21290323  ;;  %vm780_vm10 = vcmp.le.f32.partialorder %v1041_v0, 0.25483873  ;;  %v1145_v27 = vsel %vm681_vm2, 1.0, %v1011_v11  ;;  %v1150_v28 = vsel %vm605_vm3, 1.0, %v1011_v11 }
  0x21   :  { %vm781_vm11 = vcmp.le.f32.partialorder %v1045_v1, 0.25483873  ;;  %vm705_vm12 = vcmp.le.f32.partialorder %v1041_v0, 0.22967742  ;;  %v1153_v29 = vsel %vm606_vm5, 1.0, %v1011_v11  ;;  %v1156_v30 = vsel %vm730_vm6, 1.0, %v1011_v11 }
  0x22   :  { %v1159_v31 = vsel %vm731_vm7, 1.0, %v1011_v11  ;;  %v1162_v32 = vsel %vm655_vm8, 1.0, %v1011_v11  ;;  %v1165_v33 = vsel %vm656_vm9, 1.0, %v1011_v11  ;;  %v1168_v34 = vsel %vm780_vm10, 1.0, %v1011_v11 }
  0x23   :  { %vm706_vm1 = vcmp.le.f32.partialorder %v1045_v1, 0.22967742  ;;  %v1172_v35 = vsel %vm781_vm11, 1.0, %v1011_v11  ;;  %v1175_v36 = vsel %vm705_vm12, 1.0, %v1011_v11  ;;  %vm830_vm2 = vcmp.le.f32.partialorder %v1041_v0, 0.2716129 }
  0x24   :  { %vm831_vm3 = vcmp.le.f32.partialorder %v1045_v1, 0.2716129  ;;  %vm755_vm5 = vcmp.le.f32.partialorder %v1041_v0, 0.24645162  ;;  %vm756_vm6 = vcmp.le.f32.partialorder %v1045_v1, 0.24645162 }
  0x25   :  { %vm805_vm7 = vcmp.le.f32.partialorder %v1041_v0, 0.26322582  ;;  %v1189_v44 = vsel %vm706_vm1, 1.0, %v1011_v11  ;;  %v1192_v45 = vsel %vm830_vm2, 1.0, %v1011_v11  ;;  %v1195_v46 = vsel %vm831_vm3, 1.0, %v1011_v11 }
  0x26   :  { %v1203_v49 = vsel %vm755_vm5, 1.0, %v1011_v11  ;;  %v1206_v50 = vsel %vm756_vm6, 1.0, %v1011_v11  ;;  %v1218_v56 = vsel %vm805_vm7, 1.0, %v1011_v11  ;;  %vm806_vm12 = vcmp.le.f32.partialorder %v1045_v1, 0.26322582 }
  0x27   :  { %vm80_vm7 = vcmp.le.f32.partialorder %v1041_v0, 0.02 }
  0x85   :  { %v62_v24 = vpop.permute.xlu1 %61  ;;  %v31_v25 = vpop.permute.xlu0 %30 }
  0x89   :  { %v64_v37 = vpop.permute.xlu1 %63  ;;  %v33_v38 = vpop.permute.xlu0 %32 }
  0x8a   :  { %v66_v39 = vsel %vm65_vm13, %v62_v24, %v64_v37  ;;  %v69_v40 = vsel %vm65_vm13, %v64_v37, 1e+30  ;;  %v35_v41 = vsel %vm34_vm14, %v31_v25, %v33_v38  ;;  %v38_v42 = vsel %vm34_vm14, %v33_v38, 1e+30 }
  0x8b   :  { %v50_v43 = vsel %vm48_vm15, 1e+30, %v35_v41  ;;  %v51_v47 = vsel %vm49_vm0, 1e+30, %v38_v42  ;;  %v70_v51 = vsel %vm48_vm15, 1e+30, %v66_v39 }
  0x8c   :  { %v1200_v48 = vmax.f32 %v1041_v0, %v50_v43  ;;  %v71_v52 = vsel %vm49_vm0, 1e+30, %v69_v40  ;;  %v1213_v53 = vmax.f32 %v1045_v1, %v51_v47 }
  0x8d   :  { %v55_v54 = vpop.permute.xlu1 %54  ;;  %v53_v55 = vpop.permute.xlu0 %52 }
  0x8e   :  { %v60_v57 = vsel %vm56_vm4, %v55_v54, 1e+30  ;;  %v57_v58 = vsel %vm56_vm4, %v53_v55, %v55_v54  ;;  %vm509_vm13 = vcmp.le.f32.partialorder %v1200_v48, 0.16258065  ;;  %vm484_vm14 = vcmp.le.f32.partialorder %v1200_v48, 0.15419355 }
  0x8f   :  { %v1225_v59 = vmax.f32 %v1045_v1, %v60_v57  ;;  %v77_v60 = vmax.f32 %v60_v57, %v71_v52  ;;  %v1228_v61 = vmax.f32 %v1041_v0, %v57_v58  ;;  %v76_v62 = vmax.f32 %v57_v58, %v70_v51 }
  0x90   :  { %vm510_vm15 = vcmp.le.f32.partialorder %v1213_v53, 0.16258065  ;;  %v511_v63 = vsel %vm509_vm13, 1.0, %v1011_v11  ;;  %vm485_vm0 = vcmp.le.f32.partialorder %v1213_v53, 0.15419355  ;;  %v486_v2 = vsel %vm484_vm14, 1.0, %v1011_v11 }
  0x91   :  { %v1235_v3 = vmax.f32 %v1213_v53, %v77_v60  ;;  %v1238_v4 = vmax.f32 %v1200_v48, %v76_v62  ;;  %v512_v5 = vsel %vm510_vm15, 1.0, %v1011_v11  ;;  %vm513_vm4 = vcmp.le.f32.partialorder %v1228_v61, 0.16258065 }
  0x92   :  { %vm514_vm8 = vcmp.le.f32.partialorder %v1225_v59, 0.16258065  ;;  %v515_v6 = vsel %vm513_vm4, 1.0, %v1011_v11  ;;  %v487_v7 = vsel %vm485_vm0, 1.0, %v1011_v11  ;;  %vm488_vm9 = vcmp.le.f32.partialorder %v1228_v61, 0.15419355 }
  0x93   :  { %v516_v8 = vsel %vm514_vm8, 1.0, %v1011_v11  ;;  %vm517_vm10 = vcmp.le.f32.partialorder %v1238_v4, 0.16258065  ;;  %vm518_vm11 = vcmp.le.f32.partialorder %v1235_v3, 0.16258065  ;;  %v523_v9 = vadd.f32 %v515_v6, %v511_v63 }
  0x94   :  { %v519_v10 = vsel %vm517_vm10, 1.0, %v1011_v11  ;;  %v520_v24 = vsel %vm518_vm11, 1.0, %v1011_v11  ;;  %v524_v25 = vadd.f32 %v516_v8, %v512_v5  ;;  %vm489_vm1 = vcmp.le.f32.partialorder %v1225_v59, 0.15419355 }
  0x95   :  { %v521_v37 = vadd.f32 %v519_v10, %v1073_v12  ;;  %v522_v38 = vadd.f32 %v520_v24, %v1078_v13  ;;  %v490_v39 = vsel %vm488_vm9, 1.0, %v1011_v11  ;;  %v491_v40 = vsel %vm489_vm1, 1.0, %v1011_v11 }
  0x96   :  { %vm492_vm2 = vcmp.le.f32.partialorder %v1238_v4, 0.15419355  ;;  %vm493_vm3 = vcmp.le.f32.partialorder %v1235_v3, 0.15419355  ;;  %v498_v41 = vadd.f32 %v490_v39, %v486_v2  ;;  %v499_v42 = vadd.f32 %v491_v40, %v487_v7 }
  0x97   :  { %v525_v43 = vsub.f32 %v521_v37, %v523_v9  ;;  %v526_v47 = vsub.f32 %v522_v38, %v524_v25  ;;  %v494_v51 = vsel %vm492_vm2, 1.0, %v1011_v11  ;;  %v495_v52 = vsel %vm493_vm3, 1.0, %v1011_v11 }
  0x98   :  { %v496_v12 = vadd.f32 %v494_v51, %v1083_v14  ;;  %v497_v13 = vadd.f32 %v495_v52, %v1088_v15  ;;  %vm584_vm5 = vcmp.le.f32.partialorder %v1200_v48, 0.18774194  ;;  %vm585_vm6 = vcmp.le.f32.partialorder %v1213_v53, 0.18774194 }
  0x99   :  { %v527_v54 = vadd.f32 %v526_v47, %v525_v43  ;;  %v586_v55 = vsel %vm584_vm5, 1.0, %v1011_v11  ;;  %v587_v57 = vsel %vm585_vm6, 1.0, %v1011_v11  ;;  %vm588_vm13 = vcmp.le.f32.partialorder %v1228_v61, 0.18774194 }
  0x9a   :  { %v500_v58 = vsub.f32 %v496_v12, %v498_v41  ;;  %v501_v60 = vsub.f32 %v497_v13, %v499_v42  ;;  %vm589_vm14 = vcmp.le.f32.partialorder %v1225_v59, 0.18774194  ;;  %v590_v14 = vsel %vm588_vm13, 1.0, %v1011_v11 }
  0x9b   :  { %528 = vadd.xlane.f32.xlu1 %v527_v54  ;;  %v591_v15 = vsel %vm589_vm14, 1.0, %v1011_v11  ;;  %vm592_vm15 = vcmp.le.f32.partialorder %v1238_v4, 0.18774194  ;;  %vm593_vm0 = vcmp.le.f32.partialorder %v1235_v3, 0.18774194  ;;  %v598_v62 = vadd.f32 %v590_v14, %v586_v55 }
  0x9c   :  { %v502_v63 = vadd.f32 %v501_v60, %v500_v58  ;;  %v594_v2 = vsel %vm592_vm15, 1.0, %v1011_v11  ;;  %v595_v5 = vsel %vm593_vm0, 1.0, %v1011_v11  ;;  %v599_v6 = vadd.f32 %v591_v15, %v587_v57 }
  0x9d   :  { %v596_v7 = vadd.f32 %v594_v2, %v1094_v16  ;;  %v597_v8 = vadd.f32 %v595_v5, %v1099_v17  ;;  %vm534_vm4 = vcmp.le.f32.partialorder %v1200_v48, 0.17096774  ;;  %vm535_vm8 = vcmp.le.f32.partialorder %v1213_v53, 0.17096774 }
  0x9e   :  { %vm81_vm9 = vcmp.le.f32.partialorder %v1045_v1, 0.02  ;;  %503 = vadd.xlane.f32.xlu0 %v502_v63  ;;  %v536_v9 = vsel %vm534_vm4, 1.0, %v1011_v11  ;;  %vm538_vm10 = vcmp.le.f32.partialorder %v1228_v61, 0.17096774  ;;  %v1287_v10 = vsel %vm806_vm12, 1.0, %v1011_v11 }
  0x9f   :  { %vm539_vm11 = vcmp.le.f32.partialorder %v1225_v59, 0.17096774  ;;  %v600_v16 = vsub.f32 %v596_v7, %v598_v62  ;;  %v601_v17 = vsub.f32 %v597_v8, %v599_v6  ;;  %v540_v24 = vsel %vm538_vm10, 1.0, %v1011_v11 }
  0xa0   :  { %v541_v25 = vsel %vm539_vm11, 1.0, %v1011_v11  ;;  %v537_v37 = vsel %vm535_vm8, 1.0, %v1011_v11  ;;  %vm542_vm1 = vcmp.le.f32.partialorder %v1238_v4, 0.17096774  ;;  %vm543_vm2 = vcmp.le.f32.partialorder %v1235_v3, 0.17096774 }
  0xa1   :  { %v548_v38 = vadd.f32 %v540_v24, %v536_v9  ;;  %v602_v39 = vadd.f32 %v601_v17, %v600_v16  ;;  %v544_v40 = vsel %vm542_vm1, 1.0, %v1011_v11  ;;  %v545_v41 = vsel %vm543_vm2, 1.0, %v1011_v11 }
  0xa2   :  { %vm634_vm12 = vcmp.le.f32.partialorder %v1200_v48, 0.20451613  ;;  %v546_v42 = vadd.f32 %v544_v40, %v1104_v18  ;;  %v547_v43 = vadd.f32 %v545_v41, %v1109_v19  ;;  %v549_v47 = vadd.f32 %v541_v25, %v537_v37 }
  0xa3   :  { %vm635_vm3 = vcmp.le.f32.partialorder %v1213_v53, 0.20451613  ;;  %vm855_vm5 = vcmp.le.f32.partialorder %v1041_v0, 0.28000003  ;;  %603 = vadd.xlane.f32.xlu1 %v602_v39  ;;  %v636_v51 = vsel %vm634_vm12, 1.0, %v1011_v11  ;;  %v1307_v52 = vsel %vm80_vm7, 1.0, %v1011_v11 }
  0xa4   :  { %vm638_vm6 = vcmp.le.f32.partialorder %v1228_v61, 0.20451613  ;;  %vm639_vm13 = vcmp.le.f32.partialorder %v1225_v59, 0.20451613  ;;  %v550_v18 = vsub.f32 %v546_v42, %v548_v38  ;;  %v551_v12 = vsub.f32 %v547_v43, %v549_v47 }
  0xa5   :  { %v640_v19 = vsel %vm638_vm6, 1.0, %v1011_v11  ;;  %v641_v13 = vsel %vm639_vm13, 1.0, %v1011_v11  ;;  %v637_v54 = vsel %vm635_vm3, 1.0, %v1011_v11  ;;  %vm642_vm14 = vcmp.le.f32.partialorder %v1238_v4, 0.20451613 }
  0xa6   :  { %vm643_vm15 = vcmp.le.f32.partialorder %v1235_v3, 0.20451613  ;;  %v648_v55 = vadd.f32 %v640_v19, %v636_v51  ;;  %v552_v57 = vadd.f32 %v551_v12, %v550_v18  ;;  %v644_v58 = vsel %vm642_vm14, 1.0, %v1011_v11 }
  0xa7   :  { %v645_v60 = vsel %vm643_vm15, 1.0, %v1011_v11  ;;  %vm559_vm7 = vcmp.le.f32.partialorder %v1200_v48, 0.17935485  ;;  %v646_v14 = vadd.f32 %v644_v58, %v1115_v20  ;;  %v649_v62 = vadd.f32 %v641_v13, %v637_v54 }
  0xa8   :  { %v647_v15 = vadd.f32 %v645_v60, %v1120_v21  ;;  %vm560_vm0 = vcmp.le.f32.partialorder %v1213_v53, 0.17935485  ;;  %vm856_vm4 = vcmp.le.f32.partialorder %v1045_v1, 0.28000003  ;;  %553 = vadd.xlane.f32.xlu0 %v552_v57  ;;  %v561_v63 = vsel %vm559_vm7, 1.0, %v1011_v11 }
  0xa9   :  { %vm563_vm8 = vcmp.le.f32.partialorder %v1228_v61, 0.17935485  ;;  %vm564_vm10 = vcmp.le.f32.partialorder %v1225_v59, 0.17935485  ;;  %v1327_v2 = vsel %vm81_vm9, 1.0, %v1011_v11  ;;  %v650_v20 = vsub.f32 %v646_v14, %v648_v55 }
  0xaa   :  { %v651_v5 = vsub.f32 %v647_v15, %v649_v62  ;;  %v565_v21 = vsel %vm563_vm8, 1.0, %v1011_v11  ;;  %v566_v6 = vsel %vm564_vm10, 1.0, %v1011_v11  ;;  %v562_v7 = vsel %vm560_vm0, 1.0, %v1011_v11 }
  0xab   :  { %vm567_vm11 = vcmp.le.f32.partialorder %v1238_v4, 0.17935485  ;;  %vm568_vm1 = vcmp.le.f32.partialorder %v1235_v3, 0.17935485  ;;  %v573_v8 = vadd.f32 %v565_v21, %v561_v63  ;;  %vm684_vm9 = vcmp.le.f32.partialorder %v1200_v48, 0.22129034 }
  0xac   :  { %v652_v9 = vadd.f32 %v651_v5, %v650_v20  ;;  %v569_v16 = vsel %vm567_vm11, 1.0, %v1011_v11  ;;  %v570_v17 = vsel %vm568_vm1, 1.0, %v1011_v11  ;;  %v574_v37 = vadd.f32 %v566_v6, %v562_v7 }
  0xad   :  { %v571_v24 = vadd.f32 %v569_v16, %v1125_v22  ;;  %v572_v25 = vadd.f32 %v570_v17, %v1130_v23  ;;  %vm685_vm2 = vcmp.le.f32.partialorder %v1213_v53, 0.22129034  ;;  %vm130_vm12 = vcmp.le.f32.partialorder %v1041_v0, 0.036774196 }
  0xae   :  { %653 = vadd.xlane.f32.xlu1 %v652_v9  ;;  %v686_v38 = vsel %vm684_vm9, 1.0, %v1011_v11  ;;  %vm688_vm3 = vcmp.le.f32.partialorder %v1228_v61, 0.22129034  ;;  %vm689_vm6 = vcmp.le.f32.partialorder %v1225_v59, 0.22129034  ;;  %v1347_v39 = vsel %vm855_vm5, 1.0, %v1011_v11 }
  0xaf   :  { %v575_v22 = vsub.f32 %v571_v24, %v573_v8  ;;  %v576_v40 = vsub.f32 %v572_v25, %v574_v37  ;;  %v690_v23 = vsel %vm688_vm3, 1.0, %v1011_v11  ;;  %v691_v41 = vsel %vm689_vm6, 1.0, %v1011_v11 }
  0xb0   :  { %v687_v42 = vsel %vm685_vm2, 1.0, %v1011_v11  ;;  %vm692_vm13 = vcmp.le.f32.partialorder %v1238_v4, 0.22129034  ;;  %vm693_vm14 = vcmp.le.f32.partialorder %v1235_v3, 0.22129034  ;;  %v698_v43 = vadd.f32 %v690_v23, %v686_v38 }
  0xb1   :  { %v577_v47 = vadd.f32 %v576_v40, %v575_v22  ;;  %v694_v51 = vsel %vm692_vm13, 1.0, %v1011_v11  ;;  %v695_v18 = vsel %vm693_vm14, 1.0, %v1011_v11  ;;  %vm609_vm5 = vcmp.le.f32.partialorder %v1200_v48, 0.19612904 }
  0xb2   :  { %v696_v12 = vadd.f32 %v694_v51, %v1142_v26  ;;  %v697_v19 = vadd.f32 %v695_v18, %v1145_v27  ;;  %v699_v13 = vadd.f32 %v691_v41, %v687_v42  ;;  %vm610_vm15 = vcmp.le.f32.partialorder %v1213_v53, 0.19612904 }
  0xb3   :  { %vm131_vm7 = vcmp.le.f32.partialorder %v1045_v1, 0.036774196  ;;  %578 = vadd.xlane.f32.xlu0 %v577_v47  ;;  %v611_v54 = vsel %vm609_vm5, 1.0, %v1011_v11  ;;  %vm613_vm0 = vcmp.le.f32.partialorder %v1228_v61, 0.19612904  ;;  %v1367_v55 = vsel %vm856_vm4, 1.0, %v1011_v11 }
  0xb4   :  { %vm614_vm8 = vcmp.le.f32.partialorder %v1225_v59, 0.19612904  ;;  %v700_v26 = vsub.f32 %v696_v12, %v698_v43  ;;  %v701_v57 = vsub.f32 %v697_v19, %v699_v13  ;;  %v615_v27 = vsel %vm613_vm0, 1.0, %v1011_v11 }
  0xb5   :  { %v616_v58 = vsel %vm614_vm8, 1.0, %v1011_v11  ;;  %v612_v60 = vsel %vm610_vm15, 1.0, %v1011_v11  ;;  %vm617_vm10 = vcmp.le.f32.partialorder %v1238_v4, 0.19612904  ;;  %vm618_vm11 = vcmp.le.f32.partialorder %v1235_v3, 0.19612904 }
  0xb6   :  { %v623_v14 = vadd.f32 %v615_v27, %v611_v54  ;;  %v702_v15 = vadd.f32 %v701_v57, %v700_v26  ;;  %v619_v62 = vsel %vm617_vm10, 1.0, %v1011_v11  ;;  %v620_v63 = vsel %vm618_vm11, 1.0, %v1011_v11 }
  0xb7   :  { %vm734_vm4 = vcmp.le.f32.partialorder %v1200_v48, 0.23806453  ;;  %v621_v20 = vadd.f32 %v619_v62, %v1150_v28  ;;  %v622_v5 = vadd.f32 %v620_v63, %v1153_v29  ;;  %v624_v21 = vadd.f32 %v616_v58, %v612_v60 }
  0xb8   :  { %vm735_vm1 = vcmp.le.f32.partialorder %v1213_v53, 0.23806453  ;;  %vm105_vm9 = vcmp.le.f32.partialorder %v1041_v0, 0.028387096  ;;  %703 = vadd.xlane.f32.xlu1 %v702_v15  ;;  %v736_v6 = vsel %vm734_vm4, 1.0, %v1011_v11  ;;  %v1387_v7 = vsel %vm130_vm12, 1.0, %v1011_v11 }
  0xb9   :  { %vm738_vm2 = vcmp.le.f32.partialorder %v1228_v61, 0.23806453  ;;  %vm739_vm3 = vcmp.le.f32.partialorder %v1225_v59, 0.23806453  ;;  %v625_v28 = vsub.f32 %v621_v20, %v623_v14  ;;  %v626_v8 = vsub.f32 %v622_v5, %v624_v21 }
  0xba   :  { %v740_v29 = vsel %vm738_vm2, 1.0, %v1011_v11  ;;  %v741_v9 = vsel %vm739_vm3, 1.0, %v1011_v11  ;;  %v737_v16 = vsel %vm735_vm1, 1.0, %v1011_v11  ;;  %vm742_vm6 = vcmp.le.f32.partialorder %v1238_v4, 0.23806453 }
  0xbb   :  { %vm743_vm13 = vcmp.le.f32.partialorder %v1235_v3, 0.23806453  ;;  %v748_v17 = vadd.f32 %v740_v29, %v736_v6  ;;  %v627_v24 = vadd.f32 %v626_v8, %v625_v28  ;;  %v744_v25 = vsel %vm742_vm6, 1.0, %v1011_v11 }
  0xbc   :  { %v745_v37 = vsel %vm743_vm13, 1.0, %v1011_v11  ;;  %vm659_vm12 = vcmp.le.f32.partialorder %v1200_v48, 0.21290323  ;;  %v746_v38 = vadd.f32 %v744_v25, %v1156_v30  ;;  %v749_v40 = vadd.f32 %v741_v9, %v737_v16 }
  0xbd   :  { %v747_v22 = vadd.f32 %v745_v37, %v1159_v31  ;;  %vm660_vm14 = vcmp.le.f32.partialorder %v1213_v53, 0.21290323  ;;  %vm106_vm5 = vcmp.le.f32.partialorder %v1045_v1, 0.028387096  ;;  %628 = vadd.xlane.f32.xlu0 %v627_v24  ;;  %v661_v23 = vsel %vm659_vm12, 1.0, %v1011_v11 }
  0xbe   :  { %vm663_vm15 = vcmp.le.f32.partialorder %v1228_v61, 0.21290323  ;;  %vm664_vm0 = vcmp.le.f32.partialorder %v1225_v59, 0.21290323  ;;  %v1407_v41 = vsel %vm131_vm7, 1.0, %v1011_v11  ;;  %v750_v30 = vsub.f32 %v746_v38, %v748_v17 }
  0xbf   :  { %v751_v42 = vsub.f32 %v747_v22, %v749_v40  ;;  %v665_v31 = vsel %vm663_vm15, 1.0, %v1011_v11  ;;  %v666_v43 = vsel %vm664_vm0, 1.0, %v1011_v11  ;;  %v662_v47 = vsel %vm660_vm14, 1.0, %v1011_v11 }
  0xc0   :  { %vm667_vm8 = vcmp.le.f32.partialorder %v1238_v4, 0.21290323  ;;  %vm668_vm10 = vcmp.le.f32.partialorder %v1235_v3, 0.21290323  ;;  %v673_v51 = vadd.f32 %v665_v31, %v661_v23  ;;  %vm784_vm7 = vcmp.le.f32.partialorder %v1200_v48, 0.25483873 }
  0xc1   :  { %v752_v18 = vadd.f32 %v751_v42, %v750_v30  ;;  %v669_v12 = vsel %vm667_vm8, 1.0, %v1011_v11  ;;  %v670_v19 = vsel %vm668_vm10, 1.0, %v1011_v11  ;;  %v674_v26 = vadd.f32 %v666_v43, %v662_v47 }
  0xc2   :  { %v671_v13 = vadd.f32 %v669_v12, %v1162_v32  ;;  %v672_v54 = vadd.f32 %v670_v19, %v1165_v33  ;;  %vm785_vm11 = vcmp.le.f32.partialorder %v1213_v53, 0.25483873  ;;  %vm180_vm4 = vcmp.le.f32.partialorder %v1041_v0, 0.05354839 }
  0xc3   :  { %753 = vadd.xlane.f32.xlu1 %v752_v18  ;;  %v786_v57 = vsel %vm784_vm7, 1.0, %v1011_v11  ;;  %vm788_vm1 = vcmp.le.f32.partialorder %v1228_v61, 0.25483873  ;;  %vm789_vm2 = vcmp.le.f32.partialorder %v1225_v59, 0.25483873  ;;  %v1427_v27 = vsel %vm105_vm9, 1.0, %v1011_v11 }
  0xc4   :  { %v675_v32 = vsub.f32 %v671_v13, %v673_v51  ;;  %v676_v58 = vsub.f32 %v672_v54, %v674_v26  ;;  %v790_v33 = vsel %vm788_vm1, 1.0, %v1011_v11  ;;  %v791_v60 = vsel %vm789_vm2, 1.0, %v1011_v11 }
  0xc5   :  { %v787_v14 = vsel %vm785_vm11, 1.0, %v1011_v11  ;;  %vm792_vm3 = vcmp.le.f32.partialorder %v1238_v4, 0.25483873  ;;  %vm793_vm6 = vcmp.le.f32.partialorder %v1235_v3, 0.25483873  ;;  %v798_v15 = vadd.f32 %v790_v33, %v786_v57 }
  0xc6   :  { %v677_v62 = vadd.f32 %v676_v58, %v675_v32  ;;  %v794_v63 = vsel %vm792_vm3, 1.0, %v1011_v11  ;;  %v795_v20 = vsel %vm793_vm6, 1.0, %v1011_v11  ;;  %vm709_vm9 = vcmp.le.f32.partialorder %v1200_v48, 0.22967742 }
  0xc7   :  { %v796_v5 = vadd.f32 %v794_v63, %v1168_v34  ;;  %v797_v21 = vadd.f32 %v795_v20, %v1172_v35  ;;  %v799_v6 = vadd.f32 %v791_v60, %v787_v14  ;;  %vm710_vm13 = vcmp.le.f32.partialorder %v1213_v53, 0.22967742 }
  0xc8   :  { %vm181_vm12 = vcmp.le.f32.partialorder %v1045_v1, 0.05354839  ;;  %678 = vadd.xlane.f32.xlu0 %v677_v62  ;;  %v711_v28 = vsel %vm709_vm9, 1.0, %v1011_v11  ;;  %vm713_vm14 = vcmp.le.f32.partialorder %v1228_v61, 0.22967742  ;;  %v1447_v8 = vsel %vm106_vm5, 1.0, %v1011_v11 }
  0xc9   :  { %vm714_vm15 = vcmp.le.f32.partialorder %v1225_v59, 0.22967742  ;;  %v800_v34 = vsub.f32 %v796_v5, %v798_v15  ;;  %v801_v29 = vsub.f32 %v797_v21, %v799_v6  ;;  %v715_v35 = vsel %vm713_vm14, 1.0, %v1011_v11 }
  0xca   :  { %v716_v9 = vsel %vm714_vm15, 1.0, %v1011_v11  ;;  %v712_v16 = vsel %vm710_vm13, 1.0, %v1011_v11  ;;  %vm717_vm0 = vcmp.le.f32.partialorder %v1238_v4, 0.22967742  ;;  %vm718_vm8 = vcmp.le.f32.partialorder %v1235_v3, 0.22967742 }
  0xcb   :  { %v723_v17 = vadd.f32 %v715_v35, %v711_v28  ;;  %v802_v24 = vadd.f32 %v801_v29, %v800_v34  ;;  %v719_v25 = vsel %vm717_vm0, 1.0, %v1011_v11  ;;  %v720_v37 = vsel %vm718_vm8, 1.0, %v1011_v11 }
  0xcc   :  { %vm834_vm5 = vcmp.le.f32.partialorder %v1200_v48, 0.2716129  ;;  %v721_v38 = vadd.f32 %v719_v25, %v1175_v36  ;;  %v722_v22 = vadd.f32 %v720_v37, %v1189_v44  ;;  %v724_v40 = vadd.f32 %v716_v9, %v712_v16 }
  0xcd   :  { %vm835_vm10 = vcmp.le.f32.partialorder %v1213_v53, 0.2716129  ;;  %vm155_vm7 = vcmp.le.f32.partialorder %v1041_v0, 0.045161292  ;;  %803 = vadd.xlane.f32.xlu1 %v802_v24  ;;  %v836_v23 = vsel %vm834_vm5, 1.0, %v1011_v11  ;;  %v1467_v30 = vsel %vm180_vm4, 1.0, %v1011_v11 }
  0xce   :  { %vm838_vm11 = vcmp.le.f32.partialorder %v1228_v61, 0.2716129  ;;  %vm839_vm1 = vcmp.le.f32.partialorder %v1225_v59, 0.2716129  ;;  %v725_v36 = vsub.f32 %v721_v38, %v723_v17  ;;  %v726_v42 = vsub.f32 %v722_v22, %v724_v40 }
  0xcf   :  { %v840_v44 = vsel %vm838_vm11, 1.0, %v1011_v11  ;;  %v841_v31 = vsel %vm839_vm1, 1.0, %v1011_v11  ;;  %v837_v43 = vsel %vm835_vm10, 1.0, %v1011_v11  ;;  %vm842_vm2 = vcmp.le.f32.partialorder %v1238_v4, 0.2716129 }
  0xd0   :  { %vm843_vm3 = vcmp.le.f32.partialorder %v1235_v3, 0.2716129  ;;  %v848_v47 = vadd.f32 %v840_v44, %v836_v23  ;;  %v727_v51 = vadd.f32 %v726_v42, %v725_v36  ;;  %v844_v18 = vsel %vm842_vm2, 1.0, %v1011_v11 }
  0xd1   :  { %v845_v12 = vsel %vm843_vm3, 1.0, %v1011_v11  ;;  %vm759_vm4 = vcmp.le.f32.partialorder %v1200_v48, 0.24645162  ;;  %v846_v19 = vadd.f32 %v844_v18, %v1192_v45  ;;  %v849_v54 = vadd.f32 %v841_v31, %v837_v43 }
  0xd2   :  { %v847_v13 = vadd.f32 %v845_v12, %v1195_v46  ;;  %vm760_vm6 = vcmp.le.f32.partialorder %v1213_v53, 0.24645162  ;;  %vm156_vm9 = vcmp.le.f32.partialorder %v1045_v1, 0.045161292  ;;  %728 = vadd.xlane.f32.xlu0 %v727_v51  ;;  %v761_v26 = vsel %vm759_vm4, 1.0, %v1011_v11 }
  0xd3   :  { %vm763_vm13 = vcmp.le.f32.partialorder %v1228_v61, 0.24645162  ;;  %vm764_vm14 = vcmp.le.f32.partialorder %v1225_v59, 0.24645162  ;;  %v1487_v57 = vsel %vm181_vm12, 1.0, %v1011_v11  ;;  %v850_v45 = vsub.f32 %v846_v19, %v848_v47 }
  0xd4   :  { %v851_v32 = vsub.f32 %v847_v13, %v849_v54  ;;  %v765_v46 = vsel %vm763_vm13, 1.0, %v1011_v11  ;;  %v766_v58 = vsel %vm764_vm14, 1.0, %v1011_v11  ;;  %v762_v33 = vsel %vm760_vm6, 1.0, %v1011_v11 }
  0xd5   :  { %vm767_vm15 = vcmp.le.f32.partialorder %v1238_v4, 0.24645162  ;;  %vm768_vm0 = vcmp.le.f32.partialorder %v1235_v3, 0.24645162  ;;  %v773_v60 = vadd.f32 %v765_v46, %v761_v26  ;;  %vm809_vm12 = vcmp.le.f32.partialorder %v1200_v48, 0.26322582 }
  0xd6   :  { %v852_v14 = vadd.f32 %v851_v32, %v850_v45  ;;  %v769_v15 = vsel %vm767_vm15, 1.0, %v1011_v11  ;;  %v770_v62 = vsel %vm768_vm0, 1.0, %v1011_v11  ;;  %v774_v5 = vadd.f32 %v766_v58, %v762_v33 }
  0xd7   :  { %v771_v63 = vadd.f32 %v769_v15, %v1203_v49  ;;  %v772_v20 = vadd.f32 %v770_v62, %v1206_v50  ;;  %vm810_vm8 = vcmp.le.f32.partialorder %v1213_v53, 0.26322582  ;;  %vm230_vm5 = vcmp.le.f32.partialorder %v1041_v0, 0.07032259 }
  0xd8   :  { %853 = vadd.xlane.f32.xlu1 %v852_v14  ;;  %v811_v21 = vsel %vm809_vm12, 1.0, %v1011_v11  ;;  %vm813_vm10 = vcmp.le.f32.partialorder %v1228_v61, 0.26322582  ;;  %vm814_vm11 = vcmp.le.f32.partialorder %v1225_v59, 0.26322582  ;;  %v1507_v6 = vsel %vm155_vm7, 1.0, %v1011_v11 }
  0xd9   :  { %v775_v49 = vsub.f32 %v771_v63, %v773_v60  ;;  %v776_v28 = vsub.f32 %v772_v20, %v774_v5  ;;  %v815_v50 = vsel %vm813_vm10, 1.0, %v1011_v11  ;;  %v816_v34 = vsel %vm814_vm11, 1.0, %v1011_v11 }
  0xda   :  { %v812_v29 = vsel %vm810_vm8, 1.0, %v1011_v11  ;;  %vm817_vm1 = vcmp.le.f32.partialorder %v1238_v4, 0.26322582  ;;  %vm818_vm2 = vcmp.le.f32.partialorder %v1235_v3, 0.26322582  ;;  %v823_v35 = vadd.f32 %v815_v50, %v811_v21 }
  0xdb   :  { %v777_v9 = vadd.f32 %v776_v28, %v775_v49  ;;  %v819_v16 = vsel %vm817_vm1, 1.0, %v1011_v11  ;;  %v820_v17 = vsel %vm818_vm2, 1.0, %v1011_v11  ;;  %vm84_vm7 = vcmp.le.f32.partialorder %v1200_v48, 0.02 }
  0xdc   :  { %v821_v24 = vadd.f32 %v819_v16, %v1218_v56  ;;  %v822_v25 = vadd.f32 %v820_v17, %v1287_v10  ;;  %v824_v37 = vadd.f32 %v816_v34, %v812_v29  ;;  %vm85_vm3 = vcmp.le.f32.partialorder %v1213_v53, 0.02 }
  0xdd   :  { %vm231_vm4 = vcmp.le.f32.partialorder %v1045_v1, 0.07032259  ;;  %778 = vadd.xlane.f32.xlu0 %v777_v9  ;;  %v86_v38 = vsel %vm84_vm7, 1.0, %v1011_v11  ;;  %vm88_vm6 = vcmp.le.f32.partialorder %v1228_v61, 0.02  ;;  %v1527_v22 = vsel %vm156_vm9, 1.0, %v1011_v11 }
  0xde   :  { %vm89_vm13 = vcmp.le.f32.partialorder %v1225_v59, 0.02  ;;  %v825_v56 = vsub.f32 %v821_v24, %v823_v35  ;;  %v826_v40 = vsub.f32 %v822_v25, %v824_v37  ;;  %v90_v10 = vsel %vm88_vm6, 1.0, %v1011_v11 }
  0xdf   :  { %v91_v23 = vsel %vm89_vm13, 1.0, %v1011_v11  ;;  %v87_v36 = vsel %vm85_vm3, 1.0, %v1011_v11  ;;  %vm92_vm14 = vcmp.le.f32.partialorder %v1238_v4, 0.02  ;;  %vm93_vm15 = vcmp.le.f32.partialorder %v1235_v3, 0.02 }
  0xe0   :  { %v98_v42 = vadd.f32 %v90_v10, %v86_v38  ;;  %v827_v44 = vadd.f32 %v826_v40, %v825_v56  ;;  %v94_v31 = vsel %vm92_vm14, 1.0, %v1011_v11  ;;  %v95_v43 = vsel %vm93_vm15, 1.0, %v1011_v11 }
  0xe1   :  { %vm859_vm9 = vcmp.le.f32.partialorder %v1200_v48, 0.28000003  ;;  %v96_v47 = vadd.f32 %v94_v31, %v1307_v52  ;;  %v97_v51 = vadd.f32 %v95_v43, %v1327_v2  ;;  %v99_v18 = vadd.f32 %v91_v23, %v87_v36 }
  0xe2   :  { %vm860_vm0 = vcmp.le.f32.partialorder %v1213_v53, 0.28000003  ;;  %vm205_vm12 = vcmp.le.f32.partialorder %v1041_v0, 0.061935484  ;;  %828 = vadd.xlane.f32.xlu0 %v827_v44  ;;  %v861_v12 = vsel %vm859_vm9, 1.0, %v1011_v11  ;;  %v1547_v19 = vsel %vm230_vm5, 1.0, %v1011_v11 }
  0xe3   :  { %vm863_vm8 = vcmp.le.f32.partialorder %v1228_v61, 0.28000003  ;;  %vm864_vm10 = vcmp.le.f32.partialorder %v1225_v59, 0.28000003  ;;  %v100_v52 = vsub.f32 %v96_v47, %v98_v42  ;;  %v101_v13 = vsub.f32 %v97_v51, %v99_v18  ;;  %v1600_v42 = vld [vmem:[#allocation2 + $0x8] sm:$0xff] }
  0xe4   :  { %v865_v2 = vsel %vm863_vm8, 1.0, %v1011_v11  ;;  %v866_v54 = vsel %vm864_vm10, 1.0, %v1011_v11  ;;  %v862_v26 = vsel %vm860_vm0, 1.0, %v1011_v11  ;;  %vm867_vm11 = vcmp.le.f32.partialorder %v1238_v4, 0.28000003 }
  0xe5   :  { %vm868_vm1 = vcmp.le.f32.partialorder %v1235_v3, 0.28000003  ;;  %v873_v45 = vadd.f32 %v865_v2, %v861_v12  ;;  %v102_v32 = vadd.f32 %v101_v13, %v100_v52  ;;  %v869_v46 = vsel %vm867_vm11, 1.0, %v1011_v11 }
  0xe6   :  { %v870_v58 = vsel %vm868_vm1, 1.0, %v1011_v11  ;;  %vm134_vm5 = vcmp.le.f32.partialorder %v1200_v48, 0.036774196  ;;  %v871_v33 = vadd.f32 %v869_v46, %v1347_v39  ;;  %v874_v14 = vadd.f32 %v866_v54, %v862_v26  ;;  %v1622_v26 = vld [vmem:[#allocation2] sm:$0xff] }
  0xe7   :  { %v872_v60 = vadd.f32 %v870_v58, %v1367_v55  ;;  %vm135_vm2 = vcmp.le.f32.partialorder %v1213_v53, 0.036774196  ;;  %vm206_vm7 = vcmp.le.f32.partialorder %v1045_v1, 0.061935484  ;;  %103 = vadd.xlane.f32.xlu1 %v102_v32  ;;  %v136_v15 = vsel %vm134_vm5, 1.0, %v1011_v11 }
  0xe8   :  { %vm138_vm3 = vcmp.le.f32.partialorder %v1228_v61, 0.036774196  ;;  %vm139_vm6 = vcmp.le.f32.partialorder %v1225_v59, 0.036774196  ;;  %v1567_v62 = vsel %vm231_vm4, 1.0, %v1011_v11  ;;  %v875_v39 = vsub.f32 %v871_v33, %v873_v45 }
  0xe9   :  { %v876_v63 = vsub.f32 %v872_v60, %v874_v14  ;;  %v140_v55 = vsel %vm138_vm3, 1.0, %v1011_v11  ;;  %v141_v20 = vsel %vm139_vm6, 1.0, %v1011_v11  ;;  %v137_v5 = vsel %vm135_vm2, 1.0, %v1011_v11 }
  0xea   :  { %vm142_vm13 = vcmp.le.f32.partialorder %v1238_v4, 0.036774196  ;;  %vm143_vm14 = vcmp.le.f32.partialorder %v1235_v3, 0.036774196  ;;  %v148_v21 = vadd.f32 %v140_v55, %v136_v15  ;;  %vm109_vm4 = vcmp.le.f32.partialorder %v1200_v48, 0.028387096 }
  0xeb   :  { %v877_v49 = vadd.f32 %v876_v63, %v875_v39  ;;  %v144_v28 = vsel %vm142_vm13, 1.0, %v1011_v11  ;;  %v145_v50 = vsel %vm143_vm14, 1.0, %v1011_v11  ;;  %v149_v35 = vadd.f32 %v141_v20, %v137_v5 }
  0xec   :  { %v146_v34 = vadd.f32 %v144_v28, %v1387_v7  ;;  %v147_v29 = vadd.f32 %v145_v50, %v1407_v41  ;;  %vm110_vm15 = vcmp.le.f32.partialorder %v1213_v53, 0.028387096  ;;  %vm280_vm9 = vcmp.le.f32.partialorder %v1041_v0, 0.08709678 }
  0xed   :  { %878 = vadd.xlane.f32.xlu0 %v877_v49  ;;  %v111_v9 = vsel %vm109_vm4, 1.0, %v1011_v11  ;;  %vm113_vm0 = vcmp.le.f32.partialorder %v1228_v61, 0.028387096  ;;  %vm114_vm8 = vcmp.le.f32.partialorder %v1225_v59, 0.028387096  ;;  %v1587_v16 = vsel %vm205_vm12, 1.0, %v1011_v11 }
  0xee   :  { %v150_v7 = vsub.f32 %v146_v34, %v148_v21  ;;  %v151_v17 = vsub.f32 %v147_v29, %v149_v35  ;;  %v115_v41 = vsel %vm113_vm0, 1.0, %v1011_v11  ;;  %v116_v24 = vsel %vm114_vm8, 1.0, %v1011_v11 }
  0xef   :  { %v112_v25 = vsel %vm110_vm15, 1.0, %v1011_v11  ;;  %vm117_vm10 = vcmp.le.f32.partialorder %v1238_v4, 0.028387096  ;;  %vm118_vm11 = vcmp.le.f32.partialorder %v1235_v3, 0.028387096  ;;  %v123_v37 = vadd.f32 %v115_v41, %v111_v9 }
  0xf0   :  { %v152_v38 = vadd.f32 %v151_v17, %v150_v7  ;;  %v119_v56 = vsel %vm117_vm10, 1.0, %v1011_v11  ;;  %v120_v40 = vsel %vm118_vm11, 1.0, %v1011_v11  ;;  %vm184_vm12 = vcmp.le.f32.partialorder %v1200_v48, 0.05354839 }
  0xf1   :  { %v121_v10 = vadd.f32 %v119_v56, %v1427_v27  ;;  %v122_v23 = vadd.f32 %v120_v40, %v1447_v8  ;;  %v124_v36 = vadd.f32 %v116_v24, %v112_v25  ;;  %vm185_vm1 = vcmp.le.f32.partialorder %v1213_v53, 0.05354839 }
  0xf2   :  { %vm281_vm5 = vcmp.le.f32.partialorder %v1600_v42, 0.08709678  ;;  %153 = vadd.xlane.f32.xlu1 %v152_v38  ;;  %v186_v44 = vsel %vm184_vm12, 1.0, %v1011_v11  ;;  %vm188_vm2 = vcmp.le.f32.partialorder %v1228_v61, 0.05354839  ;;  %v1609_v27 = vsel %vm206_vm7, 1.0, %v1011_v11 }
  0xf3   :  { %vm189_vm3 = vcmp.le.f32.partialorder %v1225_v59, 0.05354839  ;;  %v125_v8 = vsub.f32 %v121_v10, %v123_v37  ;;  %v126_v31 = vsub.f32 %v122_v23, %v124_v36  ;;  %v190_v43 = vsel %vm188_vm2, 1.0, %v1011_v11 }
  0xf4   :  { %v191_v47 = vsel %vm189_vm3, 1.0, %v1011_v11  ;;  %v187_v51 = vsel %vm185_vm1, 1.0, %v1011_v11  ;;  %vm192_vm6 = vcmp.le.f32.partialorder %v1238_v4, 0.05354839  ;;  %vm193_vm13 = vcmp.le.f32.partialorder %v1235_v3, 0.05354839 }
  0xf5   :  { %v198_v18 = vadd.f32 %v190_v43, %v186_v44  ;;  %v127_v12 = vadd.f32 %v126_v31, %v125_v8  ;;  %v194_v52 = vsel %vm192_vm6, 1.0, %v1011_v11  ;;  %v195_v1 = vsel %vm193_vm13, 1.0, %v1011_v11 }
  0xf6   :  { %vm159_vm7 = vcmp.le.f32.partialorder %v1200_v48, 0.045161292  ;;  %v196_v13 = vadd.f32 %v194_v52, %v1467_v30  ;;  %v197_v2 = vadd.f32 %v195_v1, %v1487_v57  ;;  %v199_v54 = vadd.f32 %v191_v47, %v187_v51 }
  0xf7   :  { %vm160_vm14 = vcmp.le.f32.partialorder %v1213_v53, 0.045161292  ;;  %vm255_vm4 = vcmp.le.f32.partialorder %v1622_v26, 0.07870968  ;;  %128 = vadd.xlane.f32.xlu0 %v127_v12  ;;  %v161_v45 = vsel %vm159_vm7, 1.0, %v1011_v11  ;;  %v1631_v30 = vsel %vm280_vm9, 1.0, %v1011_v11 }
  0xf8   :  { %vm163_vm15 = vcmp.le.f32.partialorder %v1228_v61, 0.045161292  ;;  %vm164_vm0 = vcmp.le.f32.partialorder %v1225_v59, 0.045161292  ;;  %v200_v57 = vsub.f32 %v196_v13, %v198_v18  ;;  %v201_v32 = vsub.f32 %v197_v2, %v199_v54 }
  0xf9   :  { %v165_v46 = vsel %vm163_vm15, 1.0, %v1011_v11  ;;  %v166_v58 = vsel %vm164_vm0, 1.0, %v1011_v11  ;;  %v162_v33 = vsel %vm160_vm14, 1.0, %v1011_v11  ;;  %vm167_vm8 = vcmp.le.f32.partialorder %v1238_v4, 0.045161292 }
  0xfa   :  { %vm168_vm10 = vcmp.le.f32.partialorder %v1235_v3, 0.045161292  ;;  %v173_v60 = vadd.f32 %v165_v46, %v161_v45  ;;  %v202_v14 = vadd.f32 %v201_v32, %v200_v57  ;;  %v169_v15 = vsel %vm167_vm8, 1.0, %v1011_v11 }
  0xfb   :  { %v170_v0 = vsel %vm168_vm10, 1.0, %v1011_v11  ;;  %vm234_vm9 = vcmp.le.f32.partialorder %v1200_v48, 0.07032259  ;;  %v171_v39 = vadd.f32 %v169_v15, %v1507_v6  ;;  %v174_v55 = vadd.f32 %v166_v58, %v162_v33 }
  0xfc   :  { %v172_v63 = vadd.f32 %v170_v0, %v1527_v22  ;;  %vm235_vm11 = vcmp.le.f32.partialorder %v1213_v53, 0.07032259  ;;  %vm256_vm12 = vcmp.le.f32.partialorder %v1600_v42, 0.07870968  ;;  %203 = vadd.xlane.f32.xlu1 %v202_v14  ;;  %v236_v20 = vsel %vm234_vm9, 1.0, %v1011_v11 }
  0xfd   :  { %vm238_vm1 = vcmp.le.f32.partialorder %v1228_v61, 0.07032259  ;;  %vm239_vm2 = vcmp.le.f32.partialorder %v1225_v59, 0.07032259  ;;  %v283_v5 = vsel %vm281_vm5, 1.0, %v1011_v11  ;;  %v175_v21 = vsub.f32 %v171_v39, %v173_v60 }
  0xfe   :  { %v176_v6 = vsub.f32 %v172_v63, %v174_v55  ;;  %v240_v22 = vsel %vm238_vm1, 1.0, %v1011_v11  ;;  %v241_v49 = vsel %vm239_vm2, 1.0, %v1011_v11  ;;  %v237_v28 = vsel %vm235_vm11, 1.0, %v1011_v11 }
  0xff   :  { %vm242_vm3 = vcmp.le.f32.partialorder %v1238_v4, 0.07032259  ;;  %vm243_vm6 = vcmp.le.f32.partialorder %v1235_v3, 0.07032259  ;;  %v248_v50 = vadd.f32 %v240_v22, %v236_v20  ;;  %vm209_vm5 = vcmp.le.f32.partialorder %v1200_v48, 0.061935484 }
 0x100   :  { %v177_v34 = vadd.f32 %v176_v6, %v175_v21  ;;  %v244_v29 = vsel %vm242_vm3, 1.0, %v1011_v11  ;;  %v245_v35 = vsel %vm243_vm6, 1.0, %v1011_v11  ;;  %v249_v17 = vadd.f32 %v241_v49, %v237_v28 }
 0x101   :  { %v246_v9 = vadd.f32 %v244_v29, %v1547_v19  ;;  %v247_v7 = vadd.f32 %v245_v35, %v1567_v62  ;;  %vm210_vm13 = vcmp.le.f32.partialorder %v1213_v53, 0.061935484  ;;  %vm330_vm7 = vcmp.le.f32.partialorder %v1622_v26, 0.10387097 }
 0x102   :  { %178 = vadd.xlane.f32.xlu0 %v177_v34  ;;  %v211_v41 = vsel %vm209_vm5, 1.0, %v1011_v11  ;;  %vm213_vm14 = vcmp.le.f32.partialorder %v1228_v61, 0.061935484  ;;  %vm214_vm15 = vcmp.le.f32.partialorder %v1225_v59, 0.061935484  ;;  %v257_v24 = vsel %vm255_vm4, 1.0, %v1011_v11 }
 0x103   :  { %v250_v25 = vsub.f32 %v246_v9, %v248_v50  ;;  %v251_v19 = vsub.f32 %v247_v7, %v249_v17  ;;  %v215_v62 = vsel %vm213_vm14, 1.0, %v1011_v11  ;;  %v216_v37 = vsel %vm214_vm15, 1.0, %v1011_v11 }
 0x104   :  { %v212_v38 = vsel %vm210_vm13, 1.0, %v1011_v11  ;;  %vm217_vm0 = vcmp.le.f32.partialorder %v1238_v4, 0.061935484  ;;  %vm218_vm8 = vcmp.le.f32.partialorder %v1235_v3, 0.061935484  ;;  %v223_v56 = vadd.f32 %v215_v62, %v211_v41 }
 0x105   :  { %v252_v40 = vadd.f32 %v251_v19, %v250_v25  ;;  %v219_v10 = vsel %vm217_vm0, 1.0, %v1011_v11  ;;  %v220_v23 = vsel %vm218_vm8, 1.0, %v1011_v11  ;;  %vm284_vm4 = vcmp.le.f32.partialorder %v1200_v48, 0.08709678 }
 0x106   :  { %v221_v36 = vadd.f32 %v219_v10, %v1587_v16  ;;  %v222_v44 = vadd.f32 %v220_v23, %v1609_v27  ;;  %v224_v8 = vadd.f32 %v216_v37, %v212_v38  ;;  %vm285_vm10 = vcmp.le.f32.partialorder %v1213_v53, 0.08709678 }
 0x107   :  { %vm331_vm9 = vcmp.le.f32.partialorder %v1600_v42, 0.10387097  ;;  %253 = vadd.xlane.f32.xlu1 %v252_v40  ;;  %v286_v31 = vsel %vm284_vm4, 1.0, %v1011_v11  ;;  %vm288_vm11 = vcmp.le.f32.partialorder %v1228_v61, 0.08709678  ;;  %v258_v43 = vsel %vm256_vm12, 1.0, %v1011_v11 }
 0x108   :  { %vm289_vm1 = vcmp.le.f32.partialorder %v1225_v59, 0.08709678  ;;  %v225_v47 = vsub.f32 %v221_v36, %v223_v56  ;;  %v226_v16 = vsub.f32 %v222_v44, %v224_v8  ;;  %v290_v27 = vsel %vm288_vm11, 1.0, %v1011_v11 }
 0x109   :  { %v291_v51 = vsel %vm289_vm1, 1.0, %v1011_v11  ;;  %v287_v18 = vsel %vm285_vm10, 1.0, %v1011_v11  ;;  %vm292_vm2 = vcmp.le.f32.partialorder %v1238_v4, 0.08709678  ;;  %vm293_vm3 = vcmp.le.f32.partialorder %v1235_v3, 0.08709678 }
 0x10a   :  { %v298_v12 = vadd.f32 %v290_v27, %v286_v31  ;;  %v227_v52 = vadd.f32 %v226_v16, %v225_v47  ;;  %v294_v1 = vsel %vm292_vm2, 1.0, %v1011_v11  ;;  %v295_v13 = vsel %vm293_vm3, 1.0, %v1011_v11 }
 0x10b   :  { %vm259_vm12 = vcmp.le.f32.partialorder %v1200_v48, 0.07870968  ;;  %v296_v2 = vadd.f32 %v294_v1, %v1631_v30  ;;  %v297_v54 = vadd.f32 %v295_v13, %v283_v5  ;;  %v299_v45 = vadd.f32 %v291_v51, %v287_v18 }
 0x10c   :  { %vm260_vm6 = vcmp.le.f32.partialorder %v1213_v53, 0.07870968  ;;  %228 = vadd.xlane.f32.xlu0 %v227_v52  ;;  %v261_v57 = vsel %vm259_vm12, 1.0, %v1011_v11  ;;  %vm263_vm5 = vcmp.le.f32.partialorder %v1228_v61, 0.07870968  ;;  %v332_v32 = vsel %vm330_vm7, 1.0, %v1011_v11 }
 0x10d   :  { %vm264_vm13 = vcmp.le.f32.partialorder %v1225_v59, 0.07870968  ;;  %v300_v46 = vsub.f32 %v296_v2, %v298_v12  ;;  %v301_v58 = vsub.f32 %v297_v54, %v299_v45  ;;  %v265_v33 = vsel %vm263_vm5, 1.0, %v1011_v11 }
 0x10e   :  { %v266_v30 = vsel %vm264_vm13, 1.0, %v1011_v11  ;;  %v262_v60 = vsel %vm260_vm6, 1.0, %v1011_v11  ;;  %vm267_vm14 = vcmp.le.f32.partialorder %v1238_v4, 0.07870968  ;;  %vm268_vm15 = vcmp.le.f32.partialorder %v1235_v3, 0.07870968 }
 0x10f   :  { %v273_v14 = vadd.f32 %v265_v33, %v261_v57  ;;  %v302_v15 = vadd.f32 %v301_v58, %v300_v46  ;;  %v269_v0 = vsel %vm267_vm14, 1.0, %v1011_v11  ;;  %v270_v39 = vsel %vm268_vm15, 1.0, %v1011_v11 }
 0x110   :  { %vm334_vm7 = vcmp.le.f32.partialorder %v1200_v48, 0.10387097  ;;  %v271_v63 = vadd.f32 %v269_v0, %v257_v24  ;;  %v272_v55 = vadd.f32 %v270_v39, %v258_v43  ;;  %v274_v20 = vadd.f32 %v266_v30, %v262_v60 }
 0x111   :  { %vm335_vm0 = vcmp.le.f32.partialorder %v1213_v53, 0.10387097  ;;  %303 = vadd.xlane.f32.xlu1 %v302_v15  ;;  %v333_v5 = vsel %vm331_vm9, 1.0, %v1011_v11  ;;  %v336_v21 = vsel %vm334_vm7, 1.0, %v1011_v11  ;;  %vm338_vm8 = vcmp.le.f32.partialorder %v1228_v61, 0.10387097 }
 0x112   :  { %vm339_vm4 = vcmp.le.f32.partialorder %v1225_v59, 0.10387097  ;;  %v275_v6 = vsub.f32 %v271_v63, %v273_v14  ;;  %v276_v22 = vsub.f32 %v272_v55, %v274_v20  ;;  %v340_v49 = vsel %vm338_vm8, 1.0, %v1011_v11 }
 0x113   :  { %v341_v28 = vsel %vm339_vm4, 1.0, %v1011_v11  ;;  %v337_v50 = vsel %vm335_vm0, 1.0, %v1011_v11  ;;  %vm342_vm10 = vcmp.le.f32.partialorder %v1238_v4, 0.10387097  ;;  %vm343_vm11 = vcmp.le.f32.partialorder %v1235_v3, 0.10387097 }
 0x114   :  { %v348_v34 = vadd.f32 %v340_v49, %v336_v21  ;;  %v277_v29 = vadd.f32 %v276_v22, %v275_v6  ;;  %v344_v35 = vsel %vm342_vm10, 1.0, %v1011_v11  ;;  %v345_v9 = vsel %vm343_vm11, 1.0, %v1011_v11 }
 0x115   :  { %vm305_vm9 = vcmp.le.f32.partialorder %v1622_v26, 0.09548387  ;;  %v346_v7 = vadd.f32 %v344_v35, %v332_v32  ;;  %v347_v17 = vadd.f32 %v345_v9, %v333_v5  ;;  %v349_v41 = vadd.f32 %v341_v28, %v337_v50 }
 0x116   :  { %vm306_vm1 = vcmp.le.f32.partialorder %v1600_v42, 0.09548387  ;;  %278 = vadd.xlane.f32.xlu0 %v277_v29  ;;  %v307_v24 = vsel %vm305_vm9, 1.0, %v1011_v11  ;;  %vm309_vm2 = vcmp.le.f32.partialorder %v1200_v48, 0.09548387 }
 0x117   :  { %v308_v25 = vsel %vm306_vm1, 1.0, %v1011_v11  ;;  %vm310_vm3 = vcmp.le.f32.partialorder %v1213_v53, 0.09548387  ;;  %v350_v19 = vsub.f32 %v346_v7, %v348_v34  ;;  %v351_v62 = vsub.f32 %v347_v17, %v349_v41 }
 0x118   :  { %v311_v37 = vsel %vm309_vm2, 1.0, %v1011_v11  ;;  %v312_v38 = vsel %vm310_vm3, 1.0, %v1011_v11  ;;  %vm313_vm12 = vcmp.le.f32.partialorder %v1228_v61, 0.09548387  ;;  %vm314_vm6 = vcmp.le.f32.partialorder %v1225_v59, 0.09548387 }
 0x119   :  { %vm317_vm5 = vcmp.le.f32.partialorder %v1238_v4, 0.09548387  ;;  %v352_v56 = vadd.f32 %v351_v62, %v350_v19  ;;  %v315_v40 = vsel %vm313_vm12, 1.0, %v1011_v11  ;;  %v316_v10 = vsel %vm314_vm6, 1.0, %v1011_v11 }
 0x11a   :  { %vm318_vm13 = vcmp.le.f32.partialorder %v1235_v3, 0.09548387  ;;  %v319_v23 = vsel %vm317_vm5, 1.0, %v1011_v11  ;;  %v323_v44 = vadd.f32 %v315_v40, %v311_v37  ;;  %v324_v8 = vadd.f32 %v316_v10, %v312_v38 }
 0x11b   :  { %v320_v36 = vsel %vm318_vm13, 1.0, %v1011_v11  ;;  %353 = vadd.xlane.f32.xlu1 %v352_v56  ;;  %v321_v31 = vadd.f32 %v319_v23, %v307_v24  ;;  %vm380_vm14 = vcmp.le.f32.partialorder %v1622_v26, 0.120645165  ;;  %vm381_vm15 = vcmp.le.f32.partialorder %v1600_v42, 0.120645165 }
 0x11c   :  { %v322_v43 = vadd.f32 %v320_v36, %v308_v25  ;;  %v382_v47 = vsel %vm380_vm14, 1.0, %v1011_v11  ;;  %v383_v16 = vsel %vm381_vm15, 1.0, %v1011_v11  ;;  %vm384_vm7 = vcmp.le.f32.partialorder %v1200_v48, 0.120645165 }
 0x11d   :  { %vm385_vm0 = vcmp.le.f32.partialorder %v1213_v53, 0.120645165  ;;  %v325_v27 = vsub.f32 %v321_v31, %v323_v44  ;;  %v386_v18 = vsel %vm384_vm7, 1.0, %v1011_v11  ;;  %vm388_vm8 = vcmp.le.f32.partialorder %v1228_v61, 0.120645165 }
 0x11e   :  { %v326_v51 = vsub.f32 %v322_v43, %v324_v8  ;;  %v387_v12 = vsel %vm385_vm0, 1.0, %v1011_v11  ;;  %vm389_vm4 = vcmp.le.f32.partialorder %v1225_v59, 0.120645165  ;;  %vm392_vm10 = vcmp.le.f32.partialorder %v1238_v4, 0.120645165 }
 0x11f   :  { %v390_v1 = vsel %vm388_vm8, 1.0, %v1011_v11  ;;  %v391_v13 = vsel %vm389_vm4, 1.0, %v1011_v11  ;;  %vm393_vm11 = vcmp.le.f32.partialorder %v1235_v3, 0.120645165  ;;  %v394_v2 = vsel %vm392_vm10, 1.0, %v1011_v11 }
 0x120   :  { %v327_v52 = vadd.f32 %v326_v51, %v325_v27  ;;  %v395_v54 = vsel %vm393_vm11, 1.0, %v1011_v11  ;;  %v398_v45 = vadd.f32 %v390_v1, %v386_v18  ;;  %v399_v57 = vadd.f32 %v391_v13, %v387_v12 }
 0x121   :  { %v396_v32 = vadd.f32 %v394_v2, %v382_v47  ;;  %v397_v46 = vadd.f32 %v395_v54, %v383_v16  ;;  %vm355_vm9 = vcmp.le.f32.partialorder %v1622_v26, 0.11225806  ;;  %vm356_vm1 = vcmp.le.f32.partialorder %v1600_v42, 0.11225806 }
 0x122   :  { %328 = vadd.xlane.f32.xlu0 %v327_v52  ;;  %v357_v58 = vsel %vm355_vm9, 1.0, %v1011_v11  ;;  %v358_v33 = vsel %vm356_vm1, 1.0, %v1011_v11  ;;  %vm359_vm2 = vcmp.le.f32.partialorder %v1200_v48, 0.11225806  ;;  %vm360_vm3 = vcmp.le.f32.partialorder %v1213_v53, 0.11225806 }
 0x123   :  { %v400_v30 = vsub.f32 %v396_v32, %v398_v45  ;;  %v401_v60 = vsub.f32 %v397_v46, %v399_v57  ;;  %v361_v14 = vsel %vm359_vm2, 1.0, %v1011_v11  ;;  %v362_v15 = vsel %vm360_vm3, 1.0, %v1011_v11 }
 0x124   :  { %vm363_vm12 = vcmp.le.f32.partialorder %v1228_v61, 0.11225806  ;;  %vm364_vm6 = vcmp.le.f32.partialorder %v1225_v59, 0.11225806  ;;  %vm367_vm5 = vcmp.le.f32.partialorder %v1238_v4, 0.11225806 }
 0x125   :  { %v402_v0 = vadd.f32 %v401_v60, %v400_v30  ;;  %v365_v39 = vsel %vm363_vm12, 1.0, %v1011_v11  ;;  %v366_v63 = vsel %vm364_vm6, 1.0, %v1011_v11  ;;  %vm368_vm13 = vcmp.le.f32.partialorder %v1235_v3, 0.11225806 }
 0x126   :  { %v369_v55 = vsel %vm367_vm5, 1.0, %v1011_v11  ;;  %v370_v20 = vsel %vm368_vm13, 1.0, %v1011_v11  ;;  %v373_v5 = vadd.f32 %v365_v39, %v361_v14  ;;  %v374_v21 = vadd.f32 %v366_v63, %v362_v15 }
 0x127   :  { %403 = vadd.xlane.f32.xlu1 %v402_v0  ;;  %v371_v6 = vadd.f32 %v369_v55, %v357_v58  ;;  %v372_v22 = vadd.f32 %v370_v20, %v358_v33  ;;  %vm430_vm14 = vcmp.le.f32.partialorder %v1622_v26, 0.13741936  ;;  %vm431_vm15 = vcmp.le.f32.partialorder %v1600_v42, 0.13741936 }
 0x128   :  { %v432_v49 = vsel %vm430_vm14, 1.0, %v1011_v11  ;;  %v433_v28 = vsel %vm431_vm15, 1.0, %v1011_v11  ;;  %vm434_vm7 = vcmp.le.f32.partialorder %v1200_v48, 0.13741936  ;;  %vm435_vm0 = vcmp.le.f32.partialorder %v1213_v53, 0.13741936 }
 0x129   :  { %v375_v50 = vsub.f32 %v371_v6, %v373_v5  ;;  %v376_v34 = vsub.f32 %v372_v22, %v374_v21  ;;  %v436_v29 = vsel %vm434_vm7, 1.0, %v1011_v11  ;;  %v437_v35 = vsel %vm435_vm0, 1.0, %v1011_v11 }
 0x12a   :  { %vm438_vm8 = vcmp.le.f32.partialorder %v1228_v61, 0.13741936  ;;  %vm439_vm4 = vcmp.le.f32.partialorder %v1225_v59, 0.13741936  ;;  %vm442_vm10 = vcmp.le.f32.partialorder %v1238_v4, 0.13741936 }
 0x12b   :  { %v377_v9 = vadd.f32 %v376_v34, %v375_v50  ;;  %v440_v7 = vsel %vm438_vm8, 1.0, %v1011_v11  ;;  %v441_v17 = vsel %vm439_vm4, 1.0, %v1011_v11  ;;  %vm443_vm11 = vcmp.le.f32.partialorder %v1235_v3, 0.13741936  ;;  %v504_v33 = vpop.xlane.xlu0 %503 }
 0x12c   :  { %v444_v41 = vsel %vm442_vm10, 1.0, %v1011_v11  ;;  %v445_v24 = vsel %vm443_vm11, 1.0, %v1011_v11  ;;  %v448_v25 = vadd.f32 %v440_v7, %v436_v29  ;;  %v449_v19 = vadd.f32 %v441_v17, %v437_v35 }
 0x12d   :  { %378 = vadd.xlane.f32.xlu0 %v377_v9  ;;  %v446_v62 = vadd.f32 %v444_v41, %v432_v49  ;;  %v447_v37 = vadd.f32 %v445_v24, %v433_v28  ;;  %vm405_vm9 = vcmp.le.f32.partialorder %v1622_v26, 0.12903227  ;;  %vm406_vm1 = vcmp.le.f32.partialorder %v1600_v42, 0.12903227 }
 0x12e   :  { %v407_v38 = vsel %vm405_vm9, 1.0, %v1011_v11  ;;  %v408_v56 = vsel %vm406_vm1, 1.0, %v1011_v11  ;;  %vm409_vm2 = vcmp.le.f32.partialorder %v1200_v48, 0.12903227  ;;  %vm410_vm3 = vcmp.le.f32.partialorder %v1213_v53, 0.12903227 }
 0x12f   :  { %v450_v40 = vsub.f32 %v446_v62, %v448_v25  ;;  %v451_v10 = vsub.f32 %v447_v37, %v449_v19  ;;  %v411_v23 = vsel %vm409_vm2, 1.0, %v1011_v11  ;;  %v412_v36 = vsel %vm410_vm3, 1.0, %v1011_v11 }
 0x130   :  { %vm413_vm12 = vcmp.le.f32.partialorder %v1228_v61, 0.12903227  ;;  %vm414_vm6 = vcmp.le.f32.partialorder %v1225_v59, 0.12903227  ;;  %vm417_vm5 = vcmp.le.f32.partialorder %v1238_v4, 0.12903227 }
 0x131   :  { %v452_v44 = vadd.f32 %v451_v10, %v450_v40  ;;  %v415_v8 = vsel %vm413_vm12, 1.0, %v1011_v11  ;;  %v416_v31 = vsel %vm414_vm6, 1.0, %v1011_v11  ;;  %vm418_vm13 = vcmp.le.f32.partialorder %v1235_v3, 0.12903227 }
 0x132   :  { %v419_v43 = vsel %vm417_vm5, 1.0, %v1011_v11  ;;  %v420_v47 = vsel %vm418_vm13, 1.0, %v1011_v11  ;;  %v423_v16 = vadd.f32 %v415_v8, %v411_v23  ;;  %v424_v27 = vadd.f32 %v416_v31, %v412_v36 }
 0x133   :  { %453 = vadd.xlane.f32.xlu1 %v452_v44  ;;  %v421_v51 = vadd.f32 %v419_v43, %v407_v38  ;;  %v422_v18 = vadd.f32 %v420_v47, %v408_v56  ;;  %vm455_vm14 = vcmp.le.f32.partialorder %v1622_v26, 0.14580645  ;;  %vm456_vm15 = vcmp.le.f32.partialorder %v1600_v42, 0.14580645 }
 0x134   :  { %v457_v12 = vsel %vm455_vm14, 1.0, %v1011_v11  ;;  %v458_v52 = vsel %vm456_vm15, 1.0, %v1011_v11  ;;  %vm459_vm7 = vcmp.le.f32.partialorder %v1200_v48, 0.14580645  ;;  %vm460_vm0 = vcmp.le.f32.partialorder %v1213_v53, 0.14580645 }
 0x135   :  { %v425_v1 = vsub.f32 %v421_v51, %v423_v16  ;;  %v426_v13 = vsub.f32 %v422_v18, %v424_v27  ;;  %vm463_vm8 = vcmp.le.f32.partialorder %v1228_v61, 0.14580645  ;;  %vm464_vm4 = vcmp.le.f32.partialorder %v1225_v59, 0.14580645  ;;  %v554_v30 = vpop.xlane.xlu0 %553 }
 0x136   :  { %vm467_vm10 = vcmp.le.f32.partialorder %v1238_v4, 0.14580645  ;;  %v465_v26 = vsel %vm463_vm8, 1.0, %v1011_v11  ;;  %v466_v42 = vsel %vm464_vm4, 1.0, %v1011_v11  ;;  %vm468_vm11 = vcmp.le.f32.partialorder %v1235_v3, 0.14580645  ;;  %v529_v3 = vpop.xlane.xlu1 %528 }
 0x137   :  { %v427_v2 = vadd.f32 %v426_v13, %v425_v1  ;;  %v461_v54 = vsel %vm459_vm7, 1.0, %v1011_v11  ;;  %v462_v45 = vsel %vm460_vm0, 1.0, %v1011_v11  ;;  %v469_v48 = vsel %vm467_vm10, 1.0, %v1011_v11 }
 0x138   :  { %v470_v53 = vsel %vm468_vm11, 1.0, %v1011_v11  ;;  %v471_v61 = vadd.f32 %v469_v48, %v457_v12  ;;  %v473_v57 = vadd.f32 %v465_v26, %v461_v54  ;;  %v474_v4 = vadd.f32 %v466_v42, %v462_v45 }
 0x139   :  { %428 = vadd.xlane.f32.xlu0 %v427_v2  ;;  %v472_v59 = vadd.f32 %v470_v53, %v458_v52  ;;  %vm880_vm9 = vcmask 7168   ;;  %vm882_vm1 = vcmask 15360   ;;  %vm884_vm2 = vcmask 23552  }
 0x13a   :  { %v475_v32 = vsub.f32 %v471_v61, %v473_v57  ;;  %v604_v14 = vpop.xlane.xlu1 %603  ;;  %v910_v11 = vsel %vm880_vm9, %v504_v33, %v529_v3  ;;  %vm886_vm3 = vcmask 31744   ;;  %vm888_vm12 = vcmask 39936  }
 0x13b   :  { %v476_v46 = vsub.f32 %v472_v59, %v474_v4  ;;  %v911_v39 = vsel %vm882_vm1, %v910_v11, %v554_v30  ;;  %vm890_vm6 = vcmask 48128   ;;  %vm892_vm5 = vcmask 56320  }
 0x13c   :  { %vm894_vm13 = vcmask 64512   ;;  %vm896_vm14 = vcmask 72704   ;;  %vm898_vm15 = vcmask 80896   ;;  %vm900_vm7 = vcmask 89088  }
 0x13d   :  { %v477_v58 = vadd.f32 %v476_v46, %v475_v32  ;;  %vm902_vm0 = vcmask 97280   ;;  %vm904_vm8 = vcmask 105472   ;;  %vm906_vm4 = vcmask 113664  }
 0x13e   :  { %v654_v0 = vpop.xlane.xlu1 %653  ;;  %vm908_vm10 = vcmask 121856   ;;  %vm929_vm11 = vcmask 130048  }
 0x13f   :  { %478 = vadd.xlane.f32.xlu0 %v477_v58 }
 0x140   :  { %v579_v60 = vpop.xlane.xlu0 %578 }
 0x141   :  { %v912_v55 = vsel %vm884_vm2, %v911_v39, %v579_v60 }
 0x142   :  { %v913_v20 = vsel %vm886_vm3, %v912_v55, %v604_v14 }
 0x145   :  { %v704_v5 = vpop.xlane.xlu1 %703 }
 0x14a   :  { %v629_v15 = vpop.xlane.xlu0 %628 }
 0x14b   :  { %v914_v21 = vsel %vm888_vm12, %v913_v20, %v629_v15 }
 0x14c   :  { %v915_v22 = vsel %vm890_vm6, %v914_v21, %v654_v0 }
 0x150   :  { %v754_v28 = vpop.xlane.xlu1 %753 }
 0x155   :  { %v679_v63 = vpop.xlane.xlu0 %678 }
 0x156   :  { %v916_v49 = vsel %vm892_vm5, %v915_v22, %v679_v63 }
 0x157   :  { %v917_v50 = vsel %vm894_vm13, %v916_v49, %v704_v5 }
 0x15a   :  { %v804_v9 = vpop.xlane.xlu1 %803 }
 0x15f   :  { %v729_v6 = vpop.xlane.xlu0 %728 }
 0x160   :  { %v918_v29 = vsel %vm896_vm14, %v917_v50, %v729_v6 }
 0x161   :  { %v919_v35 = vsel %vm898_vm15, %v918_v29, %v754_v28 }
 0x165   :  { %v854_v25 = vpop.xlane.xlu1 %853 }
 0x16a   :  { %v779_v34 = vpop.xlane.xlu0 %778 }
 0x16b   :  { %v920_v7 = vsel %vm900_vm7, %v919_v35, %v779_v34 }
 0x16c   :  { %v921_v41 = vsel %vm902_vm0, %v920_v7, %v804_v9 }
 0x16f   :  { %v829_v17 = vpop.xlane.xlu0 %828 }
 0x170   :  { %v922_v24 = vsel %vm904_vm8, %v921_v41, %v829_v17 }
 0x171   :  { %v923_v62 = vsel %vm906_vm4, %v922_v24, %v854_v25 }
 0x174   :  { %v104_v38 = vpop.xlane.xlu1 %103 }
 0x17a   :  { %v879_v19 = vpop.xlane.xlu0 %878 }
 0x17b   :  { %v924_v37 = vsel %vm908_vm10, %v923_v62, %v879_v19 }
 0x17c   :  { %926 = vrot.lane.b32.xlu1 %v924_v37, %s1012_s1 }
 0x17f   :  { %v154_v40 = vpop.xlane.xlu1 %153 }
 0x184   :  { %v129_v56 = vpop.xlane.xlu0 %128 }
 0x185   :  { %v881_v44 = vsel %vm880_vm9, %v104_v38, %v129_v56  ;;  %vm931_vm9 = vcmask 261120  }
 0x186   :  { %v883_v43 = vsel %vm882_vm1, %v881_v44, %v154_v40 }
 0x189   :  { %v204_v23 = vpop.xlane.xlu1 %203 }
 0x18f   :  { %v179_v10 = vpop.xlane.xlu0 %178 }
 0x190   :  { %v885_v47 = vsel %vm884_vm2, %v883_v43, %v179_v10 }
 0x191   :  { %v887_v27 = vsel %vm886_vm3, %v885_v47, %v204_v23 }
 0x194   :  { %v254_v8 = vpop.xlane.xlu1 %253 }
 0x199   :  { %v229_v36 = vpop.xlane.xlu0 %228 }
 0x19a   :  { %v889_v18 = vsel %vm888_vm12, %v887_v27, %v229_v36 }
 0x19b   :  { %v891_v12 = vsel %vm890_vm6, %v889_v18, %v254_v8 }
 0x19e   :  { %v304_v16 = vpop.xlane.xlu1 %303 }
 0x1a3   :  { %v279_v31 = vpop.xlane.xlu0 %278 }
 0x1a4   :  { %v893_v52 = vsel %vm892_vm5, %v891_v12, %v279_v31 }
 0x1a5   :  { %v895_v2 = vsel %vm894_vm13, %v893_v52, %v304_v16 }
 0x1a8   :  { %v354_v1 = vpop.xlane.xlu1 %353 }
 0x1af   :  { %v329_v51 = vpop.xlane.xlu0 %328 }
 0x1b0   :  { %v897_v26 = vsel %vm896_vm14, %v895_v2, %v329_v51 }
 0x1b1   :  { %v899_v54 = vsel %vm898_vm15, %v897_v26, %v354_v1 }
 0x1b4   :  { %v404_v42 = vpop.xlane.xlu1 %403 }
 0x1ba   :  { %v379_v13 = vpop.xlane.xlu0 %378 }
 0x1bb   :  { %v901_v48 = vsel %vm900_vm7, %v899_v54, %v379_v13 }
 0x1bc   :  { %v903_v53 = vsel %vm902_vm0, %v901_v48, %v404_v42 }
 0x1c0   :  { %v454_v61 = vpop.xlane.xlu1 %453 }
 0x1c6   :  { %v429_v45 = vpop.xlane.xlu0 %428 }
 0x1c7   :  { %v905_v59 = vsel %vm904_vm8, %v903_v53, %v429_v45 }
 0x1c8   :  { %v907_v4 = vsel %vm906_vm4, %v905_v59, %v454_v61 }
 0x1cc   :  { %v479_v57 = vpop.xlane.xlu0 %478 }
 0x1cd   :  { %v909_v32 = vsel %vm908_vm10, %v907_v4, %v479_v57 }
 0x1ee   :  { %v927_v46 = vpop.permute.xlu1 %926 }
 0x1ef   :  { %v930_v58 = vsel %vm929_vm11, %v909_v32, %v927_v46 }
 0x1f0   :  { %932 = vst.msk [vmem:[#allocation5] sm:$0xff] %vm931_vm9, %v930_v58 }
 0x1f1   :  { %991 = shalt.err (!%p988_p12)
}
 0x1f2   :  { %s992_s30 = scalar_lea.hbm %s1865_s2, 128 }
 0x1f3   :  { %p993_p13 = scmp.ne.s32.totalorder %s1865_s2, %s992_s30  ;;  %p996_p0 = scmp.lt.u32.totalorder %s992_s30, %s1865_s2 }
 0x1f5   :  { %p998_p1 = pnand %p996_p0, %p993_p13 }
 0x1f7   :  { %1001 = shalt.err (!%p998_p1)
}
 0x1f8   :  { %942 = dma.vmem_to_hbm [thread:$0]  %s940_s26, 128, %s1865_s2, [#allocation4]  }
 0x1f9   :  { %1004 = dma.done.wait [#allocation4], 128  }
 0x1fa   :  { %1005 = vsyncadd [#allocation4], 4294967168 }
 0x1fb   :  { %946 = vsyncpa [#allocation3], 1 }
 0x1fc   :  { %947 = vsyncpa [#allocation4], 1 }

</bundles_post_ra>
